<compile_context>
chip_gen: v5e
topology: v5e:2x2
jax: 0.10.0
libtpu: 0.0.40
codegen_flags: <defaults>
</compile_context>

<pallas_src>
import functools

import jax
import jax.numpy as jnp
from jax import lax
from jax.experimental import pallas as pl
from jax.experimental.pallas import tpu as pltpu


def _gru_block_kernel(gi_r_ref,   # (TS, B, H) f32: x W_ir^T + b_ir + b_hr
                      gi_z_ref,   # (TS, B, H) f32: x W_iz^T + b_iz + b_hz
                      gi_n_ref,   # (TS, B, H) f32: x W_in^T + b_in
                      w_hr_ref,   # (H, H) bf16: W_hr^T
                      w_hz_ref,   # (H, H) bf16: W_hz^T
                      w_hn_ref,   # (H, H) bf16: W_hn^T
                      b_hn_ref,   # (1, H) f32
                      ann_ref,    # out: (TS, B, H) f32 annotations (seq-major)
                      h_out_ref,  # out: (B, H) f32 final hidden; VMEM-resident
                                  #      across the (sequential) grid -> carries state
                      *, ts, seq_len):
    t = pl.program_id(0)

    @pl.when(t == 0)
    def _():
        h_out_ref[...] = jnp.zeros_like(h_out_ref)

    def step(s, h):
        # Only the hidden->gates projection sits on the serial critical path.
        h_b = h.astype(jnp.bfloat16)
        hr = jnp.dot(h_b, w_hr_ref[...], preferred_element_type=jnp.float32)
        hz = jnp.dot(h_b, w_hz_ref[...], preferred_element_type=jnp.float32)
        hn = jnp.dot(h_b, w_hn_ref[...], preferred_element_type=jnp.float32)
        hn = hn + b_hn_ref[...]

        r = jax.nn.sigmoid(gi_r_ref[s] + hr)
        z = jax.nn.sigmoid(gi_z_ref[s] + hz)
        n = jnp.tanh(gi_n_ref[s] + r * hn)
        h_new = (1.0 - z) * n + z * h

        if seq_len % ts != 0:
            # Padded tail timesteps must not advance the state.
            g = t * ts + s
            h_new = jnp.where(g < seq_len, h_new, h)

        ann_ref[s] = h_new.astype(ann_ref.dtype)
        return h_new

    h_final = lax.fori_loop(0, ts, step, h_out_ref[...], unroll=True)
    h_out_ref[...] = h_final


def gru_encoder_forward(inputs, embedding, w_ih, w_hh, b_ih, b_hh, *, block_ts=32):
    """inputs: (B, S) int32 token ids.

    Returns (annotations (B, S, H) f32, hidden (B, H) f32), matching the
    PyTorch GRUEncoder.forward.
    """
    B, S = inputs.shape
    V, H = embedding.shape

    # Embedding lookup (data-dependent gather) stays in XLA, gathered directly
    # into seq-major (S, B, H) layout so no activation transpose is needed.
    encoded = embedding[inputs.T]                        # (S, B, H) f32

    # Hoisted input projection: one big S-parallel matmul (bf16 in, f32 acc).
    w_ih_t = jnp.transpose(w_ih).astype(jnp.bfloat16)    # (H, 3H)
    gi = jnp.dot(encoded.astype(jnp.bfloat16).reshape(S * B, H), w_ih_t,
                 preferred_element_type=jnp.float32).reshape(S, B, 3 * H)

    # Fold biases: r/z gates absorb b_ih + b_hh; the n gate keeps only b_in here
    # (b_hn must remain inside r * (h @ W_hn + b_hn)).
    b_r = (b_ih[0:H] + b_hh[0:H]).reshape(1, H)
    b_z = (b_ih[H:2 * H] + b_hh[H:2 * H]).reshape(1, H)
    b_in = b_ih[2 * H:3 * H].reshape(1, H)
    b_hn = b_hh[2 * H:3 * H].reshape(1, H).astype(jnp.float32)

    gi_r = gi[:, :, 0:H] + b_r
    gi_z = gi[:, :, H:2 * H] + b_z
    gi_n = gi[:, :, 2 * H:3 * H] + b_in

    # Recurrent weights as three lane-aligned (H, H) bf16 tiles.
    w_hh_t = jnp.transpose(w_hh)                         # (H, 3H)
    w_hr = w_hh_t[:, 0:H].astype(jnp.bfloat16)
    w_hz = w_hh_t[:, H:2 * H].astype(jnp.bfloat16)
    w_hn = w_hh_t[:, 2 * H:3 * H].astype(jnp.bfloat16)

    # Block TS timesteps per grid step; pad S if it doesn't divide evenly.
    ts = min(block_ts, S)
    num_blocks = -(-S // ts)
    s_pad = num_blocks * ts
    if s_pad != S:
        pad = ((0, s_pad - S), (0, 0), (0, 0))
        gi_r = jnp.pad(gi_r, pad)
        gi_z = jnp.pad(gi_z, pad)
        gi_n = jnp.pad(gi_n, pad)

    kernel = functools.partial(_gru_block_kernel, ts=ts, seq_len=S)

    ann_sbh, hidden = pl.pallas_call(
        kernel,
        out_shape=(
            jax.ShapeDtypeStruct((s_pad, B, H), jnp.float32),
            jax.ShapeDtypeStruct((B, H), jnp.float32),
        ),
        grid_spec=pltpu.PrefetchScalarGridSpec(
            num_scalar_prefetch=0,
            grid=(num_blocks,),
            in_specs=[
                pl.BlockSpec((ts, B, H), lambda t: (t, 0, 0)),   # gi_r
                pl.BlockSpec((ts, B, H), lambda t: (t, 0, 0)),   # gi_z
                pl.BlockSpec((ts, B, H), lambda t: (t, 0, 0)),   # gi_n
                pl.BlockSpec((H, H), lambda t: (0, 0)),          # W_hr^T
                pl.BlockSpec((H, H), lambda t: (0, 0)),          # W_hz^T
                pl.BlockSpec((H, H), lambda t: (0, 0)),          # W_hn^T
                pl.BlockSpec((1, H), lambda t: (0, 0)),          # b_hn
            ],
            out_specs=[
                pl.BlockSpec((ts, B, H), lambda t: (t, 0, 0)),   # annotations
                pl.BlockSpec((B, H), lambda t: (0, 0)),          # final hidden (resident)
            ],
        ),
        compiler_params=pltpu.CompilerParams(
            dimension_semantics=("arbitrary",),  # recurrence: sequential grid
        ),
    )(gi_r, gi_z, gi_n, w_hr, w_hz, w_hn, b_hn)

    # Module contract is (batch, seq, hidden); drop any seq padding.
    annotations = jnp.transpose(ann_sbh[:S], (1, 0, 2))
    return annotations, hidden


def _reference_forward(inputs, embedding, w_ih, w_hh, b_ih, b_hh):
    """Pure-JAX f32 reference of the PyTorch recurrence (for sanity check)."""
    B, S = inputs.shape
    H = embedding.shape[1]
    encoded = embedding[inputs]
    h = jnp.zeros((B, H), jnp.float32)
    anns = []
    for t in range(S):
        x = encoded[:, t, :]
        gi = x @ w_ih.T + b_ih
        gh = h @ w_hh.T + b_hh
        i_r, i_z, i_n = jnp.split(gi, 3, axis=1)
        h_r, h_z, h_n = jnp.split(gh, 3, axis=1)
        r = jax.nn.sigmoid(i_r + h_r)
        z = jax.nn.sigmoid(i_z + h_z)
        n = jnp.tanh(i_n + r * h_n)
        h = (1.0 - z) * n + z * h
        anns.append(h)
    return jnp.stack(anns, axis=1), h


if __name__ == "__main__":
    # Small, deterministic setup: vocab=16, hidden=32, batch=2, seq=8.
    vocab_size, hidden_size = 16, 32
    batch_size, seq_len = 2, 8

    key = jax.random.PRNGKey(0)
    k_emb, k_wih, k_whh, k_bih, k_bhh, k_in = jax.random.split(key, 6)

    embedding = jax.random.normal(k_emb, (vocab_size, hidden_size), jnp.float32) * 0.1
    w_ih = jax.random.normal(k_wih, (3 * hidden_size, hidden_size), jnp.float32) * 0.1
    w_hh = jax.random.normal(k_whh, (3 * hidden_size, hidden_size), jnp.float32) * 0.1
    b_ih = jax.random.normal(k_bih, (3 * hidden_size,), jnp.float32) * 0.1
    b_hh = jax.random.normal(k_bhh, (3 * hidden_size,), jnp.float32) * 0.1

    inputs = jax.random.randint(k_in, (batch_size, seq_len), 0, vocab_size, jnp.int32)

    annotations, hidden = jax.jit(gru_encoder_forward)(
        inputs, embedding, w_ih, w_hh, b_ih, b_hh)
    jax.block_until_ready((annotations, hidden))

    ann_ref, hid_ref = _reference_forward(inputs, embedding, w_ih, w_hh, b_ih, b_hh)
    assert annotations.shape == (batch_size, seq_len, hidden_size)
    assert hidden.shape == (batch_size, hidden_size)
    # bf16 MXU inputs (f32 accumulate) -> slightly looser tolerance vs f32 reference.
    assert jnp.allclose(annotations, ann_ref, atol=1e-2, rtol=1e-2)
    assert jnp.allclose(hidden, hid_ref, atol=1e-2, rtol=1e-2)

    print("KERNEL_OK")
</pallas_src>

<mosaic_0001>
module attributes {stable_mosaic.version = 11 : i64} {
  func.func @_gru_block_kernel(%arg0: i32, %arg1: memref<8x2x32xf32, #tpu.memory_space<vmem>>, %arg2: memref<8x2x32xf32, #tpu.memory_space<vmem>>, %arg3: memref<8x2x32xf32, #tpu.memory_space<vmem>>, %arg4: memref<32x32xbf16, #tpu.memory_space<vmem>>, %arg5: memref<32x32xbf16, #tpu.memory_space<vmem>>, %arg6: memref<32x32xbf16, #tpu.memory_space<vmem>>, %arg7: memref<1x32xf32, #tpu.memory_space<vmem>>, %arg8: memref<8x2x32xf32, #tpu.memory_space<vmem>>, %arg9: memref<2x32xf32, #tpu.memory_space<vmem>>) attributes {dimension_semantics = [#tpu.dimension_semantics<arbitrary>], iteration_bounds = array<i64: 1>, scalar_prefetch = 0 : i64, scratch_operands = 0 : i64, tpu.core_type = #tpu.core_type<tc>, window_params = [{transform_indices = @transform_0, window_bounds = array<i64: 8, 2, 32>}, {transform_indices = @transform_1, window_bounds = array<i64: 8, 2, 32>}, {transform_indices = @transform_2, window_bounds = array<i64: 8, 2, 32>}, {pipeline_mode = #tpu.pipeline_mode<synchronous>, transform_indices = @transform_3, window_bounds = array<i64: 32, 32>}, {pipeline_mode = #tpu.pipeline_mode<synchronous>, transform_indices = @transform_4, window_bounds = array<i64: 32, 32>}, {pipeline_mode = #tpu.pipeline_mode<synchronous>, transform_indices = @transform_5, window_bounds = array<i64: 32, 32>}, {pipeline_mode = #tpu.pipeline_mode<synchronous>, transform_indices = @transform_6, window_bounds = array<i64: 1, 32>}, {transform_indices = @transform_7, window_bounds = array<i64: 8, 2, 32>}, {pipeline_mode = #tpu.pipeline_mode<synchronous>, transform_indices = @transform_8, window_bounds = array<i64: 2, 32>}]} {
    %c0_i32 = arith.constant 0 : i32
    %0 = arith.cmpi eq, %arg0, %c0_i32 : i32
    %1 = arith.extui %0 : i1 to i32
    %c0_i32_0 = arith.constant 0 : i32
    %2 = arith.cmpi ne, %1, %c0_i32_0 : i32
    scf.if %2 {
      %cst_180 = arith.constant 0.000000e+00 : f32
      %349 = vector.broadcast %cst_180 : f32 to vector<2x32xf32>
      %c0_181 = arith.constant 0 : index
      %c0_182 = arith.constant 0 : index
      %350 = vector.load %arg9[%c0_181, %c0_182] : memref<2x32xf32, #tpu.memory_space<vmem>>, vector<2x32xf32>
      tpu.vector_store %arg9[%c0_181, %c0_182], %349 {strides = array<i32>} : memref<2x32xf32, #tpu.memory_space<vmem>>, vector<2x32xf32>,
    } else {
    }
    %c0 = arith.constant 0 : index
    %c0_1 = arith.constant 0 : index
    %3 = vector.load %arg9[%c0, %c0_1] : memref<2x32xf32, #tpu.memory_space<vmem>>, vector<2x32xf32>
    %c0_i32_2 = arith.constant 0 : i32
    %4 = arith.truncf %3 : vector<2x32xf32> to vector<2x32xbf16>
    %c0_3 = arith.constant 0 : index
    %c0_4 = arith.constant 0 : index
    %5 = vector.load %arg4[%c0_3, %c0_4] : memref<32x32xbf16, #tpu.memory_space<vmem>>, vector<32x32xbf16>
    %cst = arith.constant dense<0.000000e+00> : vector<2x32xf32>
    %6 = tpu.matmul %4, %5, %cst {dimension_numbers = #tpu.dot_dimension_numbers<[1], [0], [0], [1], [0, 0, 1, 1], [], []>} : vector<2x32xbf16>, vector<32x32xbf16>, vector<2x32xf32> -> vector<2x32xf32>
    %c0_5 = arith.constant 0 : index
    %c0_6 = arith.constant 0 : index
    %7 = vector.load %arg5[%c0_5, %c0_6] : memref<32x32xbf16, #tpu.memory_space<vmem>>, vector<32x32xbf16>
    %cst_7 = arith.constant dense<0.000000e+00> : vector<2x32xf32>
    %8 = tpu.matmul %4, %7, %cst_7 {dimension_numbers = #tpu.dot_dimension_numbers<[1], [0], [0], [1], [0, 0, 1, 1], [], []>} : vector<2x32xbf16>, vector<32x32xbf16>, vector<2x32xf32> -> vector<2x32xf32>
    %c0_8 = arith.constant 0 : index
    %c0_9 = arith.constant 0 : index
    %9 = vector.load %arg6[%c0_8, %c0_9] : memref<32x32xbf16, #tpu.memory_space<vmem>>, vector<32x32xbf16>
    %cst_10 = arith.constant dense<0.000000e+00> : vector<2x32xf32>
    %10 = tpu.matmul %4, %9, %cst_10 {dimension_numbers = #tpu.dot_dimension_numbers<[1], [0], [0], [1], [0, 0, 1, 1], [], []>} : vector<2x32xbf16>, vector<32x32xbf16>, vector<2x32xf32> -> vector<2x32xf32>
    %c0_11 = arith.constant 0 : index
    %c0_12 = arith.constant 0 : index
    %11 = vector.load %arg7[%c0_11, %c0_12] : memref<1x32xf32, #tpu.memory_space<vmem>>, vector<1x32xf32>
    %12 = vector.broadcast %11 : vector<1x32xf32> to vector<2x32xf32>
    %13 = arith.addf %10, %12 : vector<2x32xf32>
    %14 = arith.index_cast %c0_i32_2 : i32 to index
    %c0_13 = arith.constant 0 : index
    %c0_14 = arith.constant 0 : index
    %15 = vector.load %arg1[%14, %c0_13, %c0_14] : memref<8x2x32xf32, #tpu.memory_space<vmem>>, vector<1x2x32xf32>
    %16 = vector.shape_cast %15 : vector<1x2x32xf32> to vector<2x32xf32>
    %17 = arith.addf %16, %6 : vector<2x32xf32>
    %18 = arith.negf %17 : vector<2x32xf32>
    %19 = math.exp %18 : vector<2x32xf32>
    %cst_15 = arith.constant 1.000000e+00 : f32
    %20 = vector.broadcast %cst_15 : f32 to vector<2x32xf32>
    %21 = arith.addf %20, %19 : vector<2x32xf32>
    %22 = arith.divf %20, %21 : vector<2x32xf32>
    %23 = arith.index_cast %c0_i32_2 : i32 to index
    %c0_16 = arith.constant 0 : index
    %c0_17 = arith.constant 0 : index
    %24 = vector.load %arg2[%23, %c0_16, %c0_17] : memref<8x2x32xf32, #tpu.memory_space<vmem>>, vector<1x2x32xf32>
    %25 = vector.shape_cast %24 : vector<1x2x32xf32> to vector<2x32xf32>
    %26 = arith.addf %25, %8 : vector<2x32xf32>
    %27 = arith.negf %26 : vector<2x32xf32>
    %28 = math.exp %27 : vector<2x32xf32>
    %cst_18 = arith.constant 1.000000e+00 : f32
    %29 = vector.broadcast %cst_18 : f32 to vector<2x32xf32>
    %30 = arith.addf %29, %28 : vector<2x32xf32>
    %31 = arith.divf %29, %30 : vector<2x32xf32>
    %32 = arith.index_cast %c0_i32_2 : i32 to index
    %c0_19 = arith.constant 0 : index
    %c0_20 = arith.constant 0 : index
    %33 = vector.load %arg3[%32, %c0_19, %c0_20] : memref<8x2x32xf32, #tpu.memory_space<vmem>>, vector<1x2x32xf32>
    %34 = vector.shape_cast %33 : vector<1x2x32xf32> to vector<2x32xf32>
    %35 = arith.mulf %22, %13 : vector<2x32xf32>
    %36 = arith.addf %34, %35 : vector<2x32xf32>
    %37 = math.tanh %36 : vector<2x32xf32>
    %cst_21 = arith.constant 1.000000e+00 : f32
    %38 = vector.broadcast %cst_21 : f32 to vector<2x32xf32>
    %39 = arith.subf %38, %31 : vector<2x32xf32>
    %40 = arith.mulf %39, %37 : vector<2x32xf32>
    %41 = arith.mulf %31, %3 : vector<2x32xf32>
    %42 = arith.addf %40, %41 : vector<2x32xf32>
    %43 = arith.index_cast %c0_i32_2 : i32 to index
    %c0_22 = arith.constant 0 : index
    %c0_23 = arith.constant 0 : index
    %44 = vector.load %arg8[%43, %c0_22, %c0_23] : memref<8x2x32xf32, #tpu.memory_space<vmem>>, vector<1x2x32xf32>
    %45 = vector.shape_cast %44 : vector<1x2x32xf32> to vector<2x32xf32>
    %46 = vector.shape_cast %42 : vector<2x32xf32> to vector<1x2x32xf32>
    tpu.vector_store %arg8[%43, %c0_22, %c0_23], %46 {strides = array<i32>} : memref<8x2x32xf32, #tpu.memory_space<vmem>>, vector<1x2x32xf32>,
    %c1_i32 = arith.constant 1 : i32
    %47 = arith.truncf %42 : vector<2x32xf32> to vector<2x32xbf16>
    %c0_24 = arith.constant 0 : index
    %c0_25 = arith.constant 0 : index
    %48 = vector.load %arg4[%c0_24, %c0_25] : memref<32x32xbf16, #tpu.memory_space<vmem>>, vector<32x32xbf16>
    %cst_26 = arith.constant dense<0.000000e+00> : vector<2x32xf32>
    %49 = tpu.matmul %47, %48, %cst_26 {dimension_numbers = #tpu.dot_dimension_numbers<[1], [0], [0], [1], [0, 0, 1, 1], [], []>} : vector<2x32xbf16>, vector<32x32xbf16>, vector<2x32xf32> -> vector<2x32xf32>
    %c0_27 = arith.constant 0 : index
    %c0_28 = arith.constant 0 : index
    %50 = vector.load %arg5[%c0_27, %c0_28] : memref<32x32xbf16, #tpu.memory_space<vmem>>, vector<32x32xbf16>
    %cst_29 = arith.constant dense<0.000000e+00> : vector<2x32xf32>
    %51 = tpu.matmul %47, %50, %cst_29 {dimension_numbers = #tpu.dot_dimension_numbers<[1], [0], [0], [1], [0, 0, 1, 1], [], []>} : vector<2x32xbf16>, vector<32x32xbf16>, vector<2x32xf32> -> vector<2x32xf32>
    %c0_30 = arith.constant 0 : index
    %c0_31 = arith.constant 0 : index
    %52 = vector.load %arg6[%c0_30, %c0_31] : memref<32x32xbf16, #tpu.memory_space<vmem>>, vector<32x32xbf16>
    %cst_32 = arith.constant dense<0.000000e+00> : vector<2x32xf32>
    %53 = tpu.matmul %47, %52, %cst_32 {dimension_numbers = #tpu.dot_dimension_numbers<[1], [0], [0], [1], [0, 0, 1, 1], [], []>} : vector<2x32xbf16>, vector<32x32xbf16>, vector<2x32xf32> -> vector<2x32xf32>
    %c0_33 = arith.constant 0 : index
    %c0_34 = arith.constant 0 : index
    %54 = vector.load %arg7[%c0_33, %c0_34] : memref<1x32xf32, #tpu.memory_space<vmem>>, vector<1x32xf32>
    %55 = vector.broadcast %54 : vector<1x32xf32> to vector<2x32xf32>
    %56 = arith.addf %53, %55 : vector<2x32xf32>
    %57 = arith.index_cast %c1_i32 : i32 to index
    %c0_35 = arith.constant 0 : index
    %c0_36 = arith.constant 0 : index
    %58 = vector.load %arg1[%57, %c0_35, %c0_36] : memref<8x2x32xf32, #tpu.memory_space<vmem>>, vector<1x2x32xf32>
    %59 = vector.shape_cast %58 : vector<1x2x32xf32> to vector<2x32xf32>
    %60 = arith.addf %59, %49 : vector<2x32xf32>
    %61 = arith.negf %60 : vector<2x32xf32>
    %62 = math.exp %61 : vector<2x32xf32>
    %cst_37 = arith.constant 1.000000e+00 : f32
    %63 = vector.broadcast %cst_37 : f32 to vector<2x32xf32>
    %64 = arith.addf %63, %62 : vector<2x32xf32>
    %65 = arith.divf %63, %64 : vector<2x32xf32>
    %66 = arith.index_cast %c1_i32 : i32 to index
    %c0_38 = arith.constant 0 : index
    %c0_39 = arith.constant 0 : index
    %67 = vector.load %arg2[%66, %c0_38, %c0_39] : memref<8x2x32xf32, #tpu.memory_space<vmem>>, vector<1x2x32xf32>
    %68 = vector.shape_cast %67 : vector<1x2x32xf32> to vector<2x32xf32>
    %69 = arith.addf %68, %51 : vector<2x32xf32>
    %70 = arith.negf %69 : vector<2x32xf32>
    %71 = math.exp %70 : vector<2x32xf32>
    %cst_40 = arith.constant 1.000000e+00 : f32
    %72 = vector.broadcast %cst_40 : f32 to vector<2x32xf32>
    %73 = arith.addf %72, %71 : vector<2x32xf32>
    %74 = arith.divf %72, %73 : vector<2x32xf32>
    %75 = arith.index_cast %c1_i32 : i32 to index
    %c0_41 = arith.constant 0 : index
    %c0_42 = arith.constant 0 : index
    %76 = vector.load %arg3[%75, %c0_41, %c0_42] : memref<8x2x32xf32, #tpu.memory_space<vmem>>, vector<1x2x32xf32>
    %77 = vector.shape_cast %76 : vector<1x2x32xf32> to vector<2x32xf32>
    %78 = arith.mulf %65, %56 : vector<2x32xf32>
    %79 = arith.addf %77, %78 : vector<2x32xf32>
    %80 = math.tanh %79 : vector<2x32xf32>
    %cst_43 = arith.constant 1.000000e+00 : f32
    %81 = vector.broadcast %cst_43 : f32 to vector<2x32xf32>
    %82 = arith.subf %81, %74 : vector<2x32xf32>
    %83 = arith.mulf %82, %80 : vector<2x32xf32>
    %84 = arith.mulf %74, %42 : vector<2x32xf32>
    %85 = arith.addf %83, %84 : vector<2x32xf32>
    %86 = arith.index_cast %c1_i32 : i32 to index
    %c0_44 = arith.constant 0 : index
    %c0_45 = arith.constant 0 : index
    %87 = vector.load %arg8[%86, %c0_44, %c0_45] : memref<8x2x32xf32, #tpu.memory_space<vmem>>, vector<1x2x32xf32>
    %88 = vector.shape_cast %87 : vector<1x2x32xf32> to vector<2x32xf32>
    %89 = vector.shape_cast %85 : vector<2x32xf32> to vector<1x2x32xf32>
    tpu.vector_store %arg8[%86, %c0_44, %c0_45], %89 {strides = array<i32>} : memref<8x2x32xf32, #tpu.memory_space<vmem>>, vector<1x2x32xf32>,
    %c2_i32 = arith.constant 2 : i32
    %90 = arith.truncf %85 : vector<2x32xf32> to vector<2x32xbf16>
    %c0_46 = arith.constant 0 : index
    %c0_47 = arith.constant 0 : index
    %91 = vector.load %arg4[%c0_46, %c0_47] : memref<32x32xbf16, #tpu.memory_space<vmem>>, vector<32x32xbf16>
    %cst_48 = arith.constant dense<0.000000e+00> : vector<2x32xf32>
    %92 = tpu.matmul %90, %91, %cst_48 {dimension_numbers = #tpu.dot_dimension_numbers<[1], [0], [0], [1], [0, 0, 1, 1], [], []>} : vector<2x32xbf16>, vector<32x32xbf16>, vector<2x32xf32> -> vector<2x32xf32>
    %c0_49 = arith.constant 0 : index
    %c0_50 = arith.constant 0 : index
    %93 = vector.load %arg5[%c0_49, %c0_50] : memref<32x32xbf16, #tpu.memory_space<vmem>>, vector<32x32xbf16>
    %cst_51 = arith.constant dense<0.000000e+00> : vector<2x32xf32>
    %94 = tpu.matmul %90, %93, %cst_51 {dimension_numbers = #tpu.dot_dimension_numbers<[1], [0], [0], [1], [0, 0, 1, 1], [], []>} : vector<2x32xbf16>, vector<32x32xbf16>, vector<2x32xf32> -> vector<2x32xf32>
    %c0_52 = arith.constant 0 : index
    %c0_53 = arith.constant 0 : index
    %95 = vector.load %arg6[%c0_52, %c0_53] : memref<32x32xbf16, #tpu.memory_space<vmem>>, vector<32x32xbf16>
    %cst_54 = arith.constant dense<0.000000e+00> : vector<2x32xf32>
    %96 = tpu.matmul %90, %95, %cst_54 {dimension_numbers = #tpu.dot_dimension_numbers<[1], [0], [0], [1], [0, 0, 1, 1], [], []>} : vector<2x32xbf16>, vector<32x32xbf16>, vector<2x32xf32> -> vector<2x32xf32>
    %c0_55 = arith.constant 0 : index
    %c0_56 = arith.constant 0 : index
    %97 = vector.load %arg7[%c0_55, %c0_56] : memref<1x32xf32, #tpu.memory_space<vmem>>, vector<1x32xf32>
    %98 = vector.broadcast %97 : vector<1x32xf32> to vector<2x32xf32>
    %99 = arith.addf %96, %98 : vector<2x32xf32>
    %100 = arith.index_cast %c2_i32 : i32 to index
    %c0_57 = arith.constant 0 : index
    %c0_58 = arith.constant 0 : index
    %101 = vector.load %arg1[%100, %c0_57, %c0_58] : memref<8x2x32xf32, #tpu.memory_space<vmem>>, vector<1x2x32xf32>
    %102 = vector.shape_cast %101 : vector<1x2x32xf32> to vector<2x32xf32>
    %103 = arith.addf %102, %92 : vector<2x32xf32>
    %104 = arith.negf %103 : vector<2x32xf32>
    %105 = math.exp %104 : vector<2x32xf32>
    %cst_59 = arith.constant 1.000000e+00 : f32
    %106 = vector.broadcast %cst_59 : f32 to vector<2x32xf32>
    %107 = arith.addf %106, %105 : vector<2x32xf32>
    %108 = arith.divf %106, %107 : vector<2x32xf32>
    %109 = arith.index_cast %c2_i32 : i32 to index
    %c0_60 = arith.constant 0 : index
    %c0_61 = arith.constant 0 : index
    %110 = vector.load %arg2[%109, %c0_60, %c0_61] : memref<8x2x32xf32, #tpu.memory_space<vmem>>, vector<1x2x32xf32>
    %111 = vector.shape_cast %110 : vector<1x2x32xf32> to vector<2x32xf32>
    %112 = arith.addf %111, %94 : vector<2x32xf32>
    %113 = arith.negf %112 : vector<2x32xf32>
    %114 = math.exp %113 : vector<2x32xf32>
    %cst_62 = arith.constant 1.000000e+00 : f32
    %115 = vector.broadcast %cst_62 : f32 to vector<2x32xf32>
    %116 = arith.addf %115, %114 : vector<2x32xf32>
    %117 = arith.divf %115, %116 : vector<2x32xf32>
    %118 = arith.index_cast %c2_i32 : i32 to index
    %c0_63 = arith.constant 0 : index
    %c0_64 = arith.constant 0 : index
    %119 = vector.load %arg3[%118, %c0_63, %c0_64] : memref<8x2x32xf32, #tpu.memory_space<vmem>>, vector<1x2x32xf32>
    %120 = vector.shape_cast %119 : vector<1x2x32xf32> to vector<2x32xf32>
    %121 = arith.mulf %108, %99 : vector<2x32xf32>
    %122 = arith.addf %120, %121 : vector<2x32xf32>
    %123 = math.tanh %122 : vector<2x32xf32>
    %cst_65 = arith.constant 1.000000e+00 : f32
    %124 = vector.broadcast %cst_65 : f32 to vector<2x32xf32>
    %125 = arith.subf %124, %117 : vector<2x32xf32>
    %126 = arith.mulf %125, %123 : vector<2x32xf32>
    %127 = arith.mulf %117, %85 : vector<2x32xf32>
    %128 = arith.addf %126, %127 : vector<2x32xf32>
    %129 = arith.index_cast %c2_i32 : i32 to index
    %c0_66 = arith.constant 0 : index
    %c0_67 = arith.constant 0 : index
    %130 = vector.load %arg8[%129, %c0_66, %c0_67] : memref<8x2x32xf32, #tpu.memory_space<vmem>>, vector<1x2x32xf32>
    %131 = vector.shape_cast %130 : vector<1x2x32xf32> to vector<2x32xf32>
    %132 = vector.shape_cast %128 : vector<2x32xf32> to vector<1x2x32xf32>
    tpu.vector_store %arg8[%129, %c0_66, %c0_67], %132 {strides = array<i32>} : memref<8x2x32xf32, #tpu.memory_space<vmem>>, vector<1x2x32xf32>,
    %c3_i32 = arith.constant 3 : i32
    %133 = arith.truncf %128 : vector<2x32xf32> to vector<2x32xbf16>
    %c0_68 = arith.constant 0 : index
    %c0_69 = arith.constant 0 : index
    %134 = vector.load %arg4[%c0_68, %c0_69] : memref<32x32xbf16, #tpu.memory_space<vmem>>, vector<32x32xbf16>
    %cst_70 = arith.constant dense<0.000000e+00> : vector<2x32xf32>
    %135 = tpu.matmul %133, %134, %cst_70 {dimension_numbers = #tpu.dot_dimension_numbers<[1], [0], [0], [1], [0, 0, 1, 1], [], []>} : vector<2x32xbf16>, vector<32x32xbf16>, vector<2x32xf32> -> vector<2x32xf32>
    %c0_71 = arith.constant 0 : index
    %c0_72 = arith.constant 0 : index
    %136 = vector.load %arg5[%c0_71, %c0_72] : memref<32x32xbf16, #tpu.memory_space<vmem>>, vector<32x32xbf16>
    %cst_73 = arith.constant dense<0.000000e+00> : vector<2x32xf32>
    %137 = tpu.matmul %133, %136, %cst_73 {dimension_numbers = #tpu.dot_dimension_numbers<[1], [0], [0], [1], [0, 0, 1, 1], [], []>} : vector<2x32xbf16>, vector<32x32xbf16>, vector<2x32xf32> -> vector<2x32xf32>
    %c0_74 = arith.constant 0 : index
    %c0_75 = arith.constant 0 : index
    %138 = vector.load %arg6[%c0_74, %c0_75] : memref<32x32xbf16, #tpu.memory_space<vmem>>, vector<32x32xbf16>
    %cst_76 = arith.constant dense<0.000000e+00> : vector<2x32xf32>
    %139 = tpu.matmul %133, %138, %cst_76 {dimension_numbers = #tpu.dot_dimension_numbers<[1], [0], [0], [1], [0, 0, 1, 1], [], []>} : vector<2x32xbf16>, vector<32x32xbf16>, vector<2x32xf32> -> vector<2x32xf32>
    %c0_77 = arith.constant 0 : index
    %c0_78 = arith.constant 0 : index
    %140 = vector.load %arg7[%c0_77, %c0_78] : memref<1x32xf32, #tpu.memory_space<vmem>>, vector<1x32xf32>
    %141 = vector.broadcast %140 : vector<1x32xf32> to vector<2x32xf32>
    %142 = arith.addf %139, %141 : vector<2x32xf32>
    %143 = arith.index_cast %c3_i32 : i32 to index
    %c0_79 = arith.constant 0 : index
    %c0_80 = arith.constant 0 : index
    %144 = vector.load %arg1[%143, %c0_79, %c0_80] : memref<8x2x32xf32, #tpu.memory_space<vmem>>, vector<1x2x32xf32>
    %145 = vector.shape_cast %144 : vector<1x2x32xf32> to vector<2x32xf32>
    %146 = arith.addf %145, %135 : vector<2x32xf32>
    %147 = arith.negf %146 : vector<2x32xf32>
    %148 = math.exp %147 : vector<2x32xf32>
    %cst_81 = arith.constant 1.000000e+00 : f32
    %149 = vector.broadcast %cst_81 : f32 to vector<2x32xf32>
    %150 = arith.addf %149, %148 : vector<2x32xf32>
    %151 = arith.divf %149, %150 : vector<2x32xf32>
    %152 = arith.index_cast %c3_i32 : i32 to index
    %c0_82 = arith.constant 0 : index
    %c0_83 = arith.constant 0 : index
    %153 = vector.load %arg2[%152, %c0_82, %c0_83] : memref<8x2x32xf32, #tpu.memory_space<vmem>>, vector<1x2x32xf32>
    %154 = vector.shape_cast %153 : vector<1x2x32xf32> to vector<2x32xf32>
    %155 = arith.addf %154, %137 : vector<2x32xf32>
    %156 = arith.negf %155 : vector<2x32xf32>
    %157 = math.exp %156 : vector<2x32xf32>
    %cst_84 = arith.constant 1.000000e+00 : f32
    %158 = vector.broadcast %cst_84 : f32 to vector<2x32xf32>
    %159 = arith.addf %158, %157 : vector<2x32xf32>
    %160 = arith.divf %158, %159 : vector<2x32xf32>
    %161 = arith.index_cast %c3_i32 : i32 to index
    %c0_85 = arith.constant 0 : index
    %c0_86 = arith.constant 0 : index
    %162 = vector.load %arg3[%161, %c0_85, %c0_86] : memref<8x2x32xf32, #tpu.memory_space<vmem>>, vector<1x2x32xf32>
    %163 = vector.shape_cast %162 : vector<1x2x32xf32> to vector<2x32xf32>
    %164 = arith.mulf %151, %142 : vector<2x32xf32>
    %165 = arith.addf %163, %164 : vector<2x32xf32>
    %166 = math.tanh %165 : vector<2x32xf32>
    %cst_87 = arith.constant 1.000000e+00 : f32
    %167 = vector.broadcast %cst_87 : f32 to vector<2x32xf32>
    %168 = arith.subf %167, %160 : vector<2x32xf32>
    %169 = arith.mulf %168, %166 : vector<2x32xf32>
    %170 = arith.mulf %160, %128 : vector<2x32xf32>
    %171 = arith.addf %169, %170 : vector<2x32xf32>
    %172 = arith.index_cast %c3_i32 : i32 to index
    %c0_88 = arith.constant 0 : index
    %c0_89 = arith.constant 0 : index
    %173 = vector.load %arg8[%172, %c0_88, %c0_89] : memref<8x2x32xf32, #tpu.memory_space<vmem>>, vector<1x2x32xf32>
    %174 = vector.shape_cast %173 : vector<1x2x32xf32> to vector<2x32xf32>
    %175 = vector.shape_cast %171 : vector<2x32xf32> to vector<1x2x32xf32>
    tpu.vector_store %arg8[%172, %c0_88, %c0_89], %175 {strides = array<i32>} : memref<8x2x32xf32, #tpu.memory_space<vmem>>, vector<1x2x32xf32>,
    %c4_i32 = arith.constant 4 : i32
    %176 = arith.truncf %171 : vector<2x32xf32> to vector<2x32xbf16>
    %c0_90 = arith.constant 0 : index
    %c0_91 = arith.constant 0 : index
    %177 = vector.load %arg4[%c0_90, %c0_91] : memref<32x32xbf16, #tpu.memory_space<vmem>>, vector<32x32xbf16>
    %cst_92 = arith.constant dense<0.000000e+00> : vector<2x32xf32>
    %178 = tpu.matmul %176, %177, %cst_92 {dimension_numbers = #tpu.dot_dimension_numbers<[1], [0], [0], [1], [0, 0, 1, 1], [], []>} : vector<2x32xbf16>, vector<32x32xbf16>, vector<2x32xf32> -> vector<2x32xf32>
    %c0_93 = arith.constant 0 : index
    %c0_94 = arith.constant 0 : index
    %179 = vector.load %arg5[%c0_93, %c0_94] : memref<32x32xbf16, #tpu.memory_space<vmem>>, vector<32x32xbf16>
    %cst_95 = arith.constant dense<0.000000e+00> : vector<2x32xf32>
    %180 = tpu.matmul %176, %179, %cst_95 {dimension_numbers = #tpu.dot_dimension_numbers<[1], [0], [0], [1], [0, 0, 1, 1], [], []>} : vector<2x32xbf16>, vector<32x32xbf16>, vector<2x32xf32> -> vector<2x32xf32>
    %c0_96 = arith.constant 0 : index
    %c0_97 = arith.constant 0 : index
    %181 = vector.load %arg6[%c0_96, %c0_97] : memref<32x32xbf16, #tpu.memory_space<vmem>>, vector<32x32xbf16>
    %cst_98 = arith.constant dense<0.000000e+00> : vector<2x32xf32>
    %182 = tpu.matmul %176, %181, %cst_98 {dimension_numbers = #tpu.dot_dimension_numbers<[1], [0], [0], [1], [0, 0, 1, 1], [], []>} : vector<2x32xbf16>, vector<32x32xbf16>, vector<2x32xf32> -> vector<2x32xf32>
    %c0_99 = arith.constant 0 : index
    %c0_100 = arith.constant 0 : index
    %183 = vector.load %arg7[%c0_99, %c0_100] : memref<1x32xf32, #tpu.memory_space<vmem>>, vector<1x32xf32>
    %184 = vector.broadcast %183 : vector<1x32xf32> to vector<2x32xf32>
    %185 = arith.addf %182, %184 : vector<2x32xf32>
    %186 = arith.index_cast %c4_i32 : i32 to index
    %c0_101 = arith.constant 0 : index
    %c0_102 = arith.constant 0 : index
    %187 = vector.load %arg1[%186, %c0_101, %c0_102] : memref<8x2x32xf32, #tpu.memory_space<vmem>>, vector<1x2x32xf32>
    %188 = vector.shape_cast %187 : vector<1x2x32xf32> to vector<2x32xf32>
    %189 = arith.addf %188, %178 : vector<2x32xf32>
    %190 = arith.negf %189 : vector<2x32xf32>
    %191 = math.exp %190 : vector<2x32xf32>
    %cst_103 = arith.constant 1.000000e+00 : f32
    %192 = vector.broadcast %cst_103 : f32 to vector<2x32xf32>
    %193 = arith.addf %192, %191 : vector<2x32xf32>
    %194 = arith.divf %192, %193 : vector<2x32xf32>
    %195 = arith.index_cast %c4_i32 : i32 to index
    %c0_104 = arith.constant 0 : index
    %c0_105 = arith.constant 0 : index
    %196 = vector.load %arg2[%195, %c0_104, %c0_105] : memref<8x2x32xf32, #tpu.memory_space<vmem>>, vector<1x2x32xf32>
    %197 = vector.shape_cast %196 : vector<1x2x32xf32> to vector<2x32xf32>
    %198 = arith.addf %197, %180 : vector<2x32xf32>
    %199 = arith.negf %198 : vector<2x32xf32>
    %200 = math.exp %199 : vector<2x32xf32>
    %cst_106 = arith.constant 1.000000e+00 : f32
    %201 = vector.broadcast %cst_106 : f32 to vector<2x32xf32>
    %202 = arith.addf %201, %200 : vector<2x32xf32>
    %203 = arith.divf %201, %202 : vector<2x32xf32>
    %204 = arith.index_cast %c4_i32 : i32 to index
    %c0_107 = arith.constant 0 : index
    %c0_108 = arith.constant 0 : index
    %205 = vector.load %arg3[%204, %c0_107, %c0_108] : memref<8x2x32xf32, #tpu.memory_space<vmem>>, vector<1x2x32xf32>
    %206 = vector.shape_cast %205 : vector<1x2x32xf32> to vector<2x32xf32>
    %207 = arith.mulf %194, %185 : vector<2x32xf32>
    %208 = arith.addf %206, %207 : vector<2x32xf32>
    %209 = math.tanh %208 : vector<2x32xf32>
    %cst_109 = arith.constant 1.000000e+00 : f32
    %210 = vector.broadcast %cst_109 : f32 to vector<2x32xf32>
    %211 = arith.subf %210, %203 : vector<2x32xf32>
    %212 = arith.mulf %211, %209 : vector<2x32xf32>
    %213 = arith.mulf %203, %171 : vector<2x32xf32>
    %214 = arith.addf %212, %213 : vector<2x32xf32>
    %215 = arith.index_cast %c4_i32 : i32 to index
    %c0_110 = arith.constant 0 : index
    %c0_111 = arith.constant 0 : index
    %216 = vector.load %arg8[%215, %c0_110, %c0_111] : memref<8x2x32xf32, #tpu.memory_space<vmem>>, vector<1x2x32xf32>
    %217 = vector.shape_cast %216 : vector<1x2x32xf32> to vector<2x32xf32>
    %218 = vector.shape_cast %214 : vector<2x32xf32> to vector<1x2x32xf32>
    tpu.vector_store %arg8[%215, %c0_110, %c0_111], %218 {strides = array<i32>} : memref<8x2x32xf32, #tpu.memory_space<vmem>>, vector<1x2x32xf32>,
    %c5_i32 = arith.constant 5 : i32
    %219 = arith.truncf %214 : vector<2x32xf32> to vector<2x32xbf16>
    %c0_112 = arith.constant 0 : index
    %c0_113 = arith.constant 0 : index
    %220 = vector.load %arg4[%c0_112, %c0_113] : memref<32x32xbf16, #tpu.memory_space<vmem>>, vector<32x32xbf16>
    %cst_114 = arith.constant dense<0.000000e+00> : vector<2x32xf32>
    %221 = tpu.matmul %219, %220, %cst_114 {dimension_numbers = #tpu.dot_dimension_numbers<[1], [0], [0], [1], [0, 0, 1, 1], [], []>} : vector<2x32xbf16>, vector<32x32xbf16>, vector<2x32xf32> -> vector<2x32xf32>
    %c0_115 = arith.constant 0 : index
    %c0_116 = arith.constant 0 : index
    %222 = vector.load %arg5[%c0_115, %c0_116] : memref<32x32xbf16, #tpu.memory_space<vmem>>, vector<32x32xbf16>
    %cst_117 = arith.constant dense<0.000000e+00> : vector<2x32xf32>
    %223 = tpu.matmul %219, %222, %cst_117 {dimension_numbers = #tpu.dot_dimension_numbers<[1], [0], [0], [1], [0, 0, 1, 1], [], []>} : vector<2x32xbf16>, vector<32x32xbf16>, vector<2x32xf32> -> vector<2x32xf32>
    %c0_118 = arith.constant 0 : index
    %c0_119 = arith.constant 0 : index
    %224 = vector.load %arg6[%c0_118, %c0_119] : memref<32x32xbf16, #tpu.memory_space<vmem>>, vector<32x32xbf16>
    %cst_120 = arith.constant dense<0.000000e+00> : vector<2x32xf32>
    %225 = tpu.matmul %219, %224, %cst_120 {dimension_numbers = #tpu.dot_dimension_numbers<[1], [0], [0], [1], [0, 0, 1, 1], [], []>} : vector<2x32xbf16>, vector<32x32xbf16>, vector<2x32xf32> -> vector<2x32xf32>
    %c0_121 = arith.constant 0 : index
    %c0_122 = arith.constant 0 : index
    %226 = vector.load %arg7[%c0_121, %c0_122] : memref<1x32xf32, #tpu.memory_space<vmem>>, vector<1x32xf32>
    %227 = vector.broadcast %226 : vector<1x32xf32> to vector<2x32xf32>
    %228 = arith.addf %225, %227 : vector<2x32xf32>
    %229 = arith.index_cast %c5_i32 : i32 to index
    %c0_123 = arith.constant 0 : index
    %c0_124 = arith.constant 0 : index
    %230 = vector.load %arg1[%229, %c0_123, %c0_124] : memref<8x2x32xf32, #tpu.memory_space<vmem>>, vector<1x2x32xf32>
    %231 = vector.shape_cast %230 : vector<1x2x32xf32> to vector<2x32xf32>
    %232 = arith.addf %231, %221 : vector<2x32xf32>
    %233 = arith.negf %232 : vector<2x32xf32>
    %234 = math.exp %233 : vector<2x32xf32>
    %cst_125 = arith.constant 1.000000e+00 : f32
    %235 = vector.broadcast %cst_125 : f32 to vector<2x32xf32>
    %236 = arith.addf %235, %234 : vector<2x32xf32>
    %237 = arith.divf %235, %236 : vector<2x32xf32>
    %238 = arith.index_cast %c5_i32 : i32 to index
    %c0_126 = arith.constant 0 : index
    %c0_127 = arith.constant 0 : index
    %239 = vector.load %arg2[%238, %c0_126, %c0_127] : memref<8x2x32xf32, #tpu.memory_space<vmem>>, vector<1x2x32xf32>
    %240 = vector.shape_cast %239 : vector<1x2x32xf32> to vector<2x32xf32>
    %241 = arith.addf %240, %223 : vector<2x32xf32>
    %242 = arith.negf %241 : vector<2x32xf32>
    %243 = math.exp %242 : vector<2x32xf32>
    %cst_128 = arith.constant 1.000000e+00 : f32
    %244 = vector.broadcast %cst_128 : f32 to vector<2x32xf32>
    %245 = arith.addf %244, %243 : vector<2x32xf32>
    %246 = arith.divf %244, %245 : vector<2x32xf32>
    %247 = arith.index_cast %c5_i32 : i32 to index
    %c0_129 = arith.constant 0 : index
    %c0_130 = arith.constant 0 : index
    %248 = vector.load %arg3[%247, %c0_129, %c0_130] : memref<8x2x32xf32, #tpu.memory_space<vmem>>, vector<1x2x32xf32>
    %249 = vector.shape_cast %248 : vector<1x2x32xf32> to vector<2x32xf32>
    %250 = arith.mulf %237, %228 : vector<2x32xf32>
    %251 = arith.addf %249, %250 : vector<2x32xf32>
    %252 = math.tanh %251 : vector<2x32xf32>
    %cst_131 = arith.constant 1.000000e+00 : f32
    %253 = vector.broadcast %cst_131 : f32 to vector<2x32xf32>
    %254 = arith.subf %253, %246 : vector<2x32xf32>
    %255 = arith.mulf %254, %252 : vector<2x32xf32>
    %256 = arith.mulf %246, %214 : vector<2x32xf32>
    %257 = arith.addf %255, %256 : vector<2x32xf32>
    %258 = arith.index_cast %c5_i32 : i32 to index
    %c0_132 = arith.constant 0 : index
    %c0_133 = arith.constant 0 : index
    %259 = vector.load %arg8[%258, %c0_132, %c0_133] : memref<8x2x32xf32, #tpu.memory_space<vmem>>, vector<1x2x32xf32>
    %260 = vector.shape_cast %259 : vector<1x2x32xf32> to vector<2x32xf32>
    %261 = vector.shape_cast %257 : vector<2x32xf32> to vector<1x2x32xf32>
    tpu.vector_store %arg8[%258, %c0_132, %c0_133], %261 {strides = array<i32>} : memref<8x2x32xf32, #tpu.memory_space<vmem>>, vector<1x2x32xf32>,
    %c6_i32 = arith.constant 6 : i32
    %262 = arith.truncf %257 : vector<2x32xf32> to vector<2x32xbf16>
    %c0_134 = arith.constant 0 : index
    %c0_135 = arith.constant 0 : index
    %263 = vector.load %arg4[%c0_134, %c0_135] : memref<32x32xbf16, #tpu.memory_space<vmem>>, vector<32x32xbf16>
    %cst_136 = arith.constant dense<0.000000e+00> : vector<2x32xf32>
    %264 = tpu.matmul %262, %263, %cst_136 {dimension_numbers = #tpu.dot_dimension_numbers<[1], [0], [0], [1], [0, 0, 1, 1], [], []>} : vector<2x32xbf16>, vector<32x32xbf16>, vector<2x32xf32> -> vector<2x32xf32>
    %c0_137 = arith.constant 0 : index
    %c0_138 = arith.constant 0 : index
    %265 = vector.load %arg5[%c0_137, %c0_138] : memref<32x32xbf16, #tpu.memory_space<vmem>>, vector<32x32xbf16>
    %cst_139 = arith.constant dense<0.000000e+00> : vector<2x32xf32>
    %266 = tpu.matmul %262, %265, %cst_139 {dimension_numbers = #tpu.dot_dimension_numbers<[1], [0], [0], [1], [0, 0, 1, 1], [], []>} : vector<2x32xbf16>, vector<32x32xbf16>, vector<2x32xf32> -> vector<2x32xf32>
    %c0_140 = arith.constant 0 : index
    %c0_141 = arith.constant 0 : index
    %267 = vector.load %arg6[%c0_140, %c0_141] : memref<32x32xbf16, #tpu.memory_space<vmem>>, vector<32x32xbf16>
    %cst_142 = arith.constant dense<0.000000e+00> : vector<2x32xf32>
    %268 = tpu.matmul %262, %267, %cst_142 {dimension_numbers = #tpu.dot_dimension_numbers<[1], [0], [0], [1], [0, 0, 1, 1], [], []>} : vector<2x32xbf16>, vector<32x32xbf16>, vector<2x32xf32> -> vector<2x32xf32>
    %c0_143 = arith.constant 0 : index
    %c0_144 = arith.constant 0 : index
    %269 = vector.load %arg7[%c0_143, %c0_144] : memref<1x32xf32, #tpu.memory_space<vmem>>, vector<1x32xf32>
    %270 = vector.broadcast %269 : vector<1x32xf32> to vector<2x32xf32>
    %271 = arith.addf %268, %270 : vector<2x32xf32>
    %272 = arith.index_cast %c6_i32 : i32 to index
    %c0_145 = arith.constant 0 : index
    %c0_146 = arith.constant 0 : index
    %273 = vector.load %arg1[%272, %c0_145, %c0_146] : memref<8x2x32xf32, #tpu.memory_space<vmem>>, vector<1x2x32xf32>
    %274 = vector.shape_cast %273 : vector<1x2x32xf32> to vector<2x32xf32>
    %275 = arith.addf %274, %264 : vector<2x32xf32>
    %276 = arith.negf %275 : vector<2x32xf32>
    %277 = math.exp %276 : vector<2x32xf32>
    %cst_147 = arith.constant 1.000000e+00 : f32
    %278 = vector.broadcast %cst_147 : f32 to vector<2x32xf32>
    %279 = arith.addf %278, %277 : vector<2x32xf32>
    %280 = arith.divf %278, %279 : vector<2x32xf32>
    %281 = arith.index_cast %c6_i32 : i32 to index
    %c0_148 = arith.constant 0 : index
    %c0_149 = arith.constant 0 : index
    %282 = vector.load %arg2[%281, %c0_148, %c0_149] : memref<8x2x32xf32, #tpu.memory_space<vmem>>, vector<1x2x32xf32>
    %283 = vector.shape_cast %282 : vector<1x2x32xf32> to vector<2x32xf32>
    %284 = arith.addf %283, %266 : vector<2x32xf32>
    %285 = arith.negf %284 : vector<2x32xf32>
    %286 = math.exp %285 : vector<2x32xf32>
    %cst_150 = arith.constant 1.000000e+00 : f32
    %287 = vector.broadcast %cst_150 : f32 to vector<2x32xf32>
    %288 = arith.addf %287, %286 : vector<2x32xf32>
    %289 = arith.divf %287, %288 : vector<2x32xf32>
    %290 = arith.index_cast %c6_i32 : i32 to index
    %c0_151 = arith.constant 0 : index
    %c0_152 = arith.constant 0 : index
    %291 = vector.load %arg3[%290, %c0_151, %c0_152] : memref<8x2x32xf32, #tpu.memory_space<vmem>>, vector<1x2x32xf32>
    %292 = vector.shape_cast %291 : vector<1x2x32xf32> to vector<2x32xf32>
    %293 = arith.mulf %280, %271 : vector<2x32xf32>
    %294 = arith.addf %292, %293 : vector<2x32xf32>
    %295 = math.tanh %294 : vector<2x32xf32>
    %cst_153 = arith.constant 1.000000e+00 : f32
    %296 = vector.broadcast %cst_153 : f32 to vector<2x32xf32>
    %297 = arith.subf %296, %289 : vector<2x32xf32>
    %298 = arith.mulf %297, %295 : vector<2x32xf32>
    %299 = arith.mulf %289, %257 : vector<2x32xf32>
    %300 = arith.addf %298, %299 : vector<2x32xf32>
    %301 = arith.index_cast %c6_i32 : i32 to index
    %c0_154 = arith.constant 0 : index
    %c0_155 = arith.constant 0 : index
    %302 = vector.load %arg8[%301, %c0_154, %c0_155] : memref<8x2x32xf32, #tpu.memory_space<vmem>>, vector<1x2x32xf32>
    %303 = vector.shape_cast %302 : vector<1x2x32xf32> to vector<2x32xf32>
    %304 = vector.shape_cast %300 : vector<2x32xf32> to vector<1x2x32xf32>
    tpu.vector_store %arg8[%301, %c0_154, %c0_155], %304 {strides = array<i32>} : memref<8x2x32xf32, #tpu.memory_space<vmem>>, vector<1x2x32xf32>,
    %c7_i32 = arith.constant 7 : i32
    %305 = arith.truncf %300 : vector<2x32xf32> to vector<2x32xbf16>
    %c0_156 = arith.constant 0 : index
    %c0_157 = arith.constant 0 : index
    %306 = vector.load %arg4[%c0_156, %c0_157] : memref<32x32xbf16, #tpu.memory_space<vmem>>, vector<32x32xbf16>
    %cst_158 = arith.constant dense<0.000000e+00> : vector<2x32xf32>
    %307 = tpu.matmul %305, %306, %cst_158 {dimension_numbers = #tpu.dot_dimension_numbers<[1], [0], [0], [1], [0, 0, 1, 1], [], []>} : vector<2x32xbf16>, vector<32x32xbf16>, vector<2x32xf32> -> vector<2x32xf32>
    %c0_159 = arith.constant 0 : index
    %c0_160 = arith.constant 0 : index
    %308 = vector.load %arg5[%c0_159, %c0_160] : memref<32x32xbf16, #tpu.memory_space<vmem>>, vector<32x32xbf16>
    %cst_161 = arith.constant dense<0.000000e+00> : vector<2x32xf32>
    %309 = tpu.matmul %305, %308, %cst_161 {dimension_numbers = #tpu.dot_dimension_numbers<[1], [0], [0], [1], [0, 0, 1, 1], [], []>} : vector<2x32xbf16>, vector<32x32xbf16>, vector<2x32xf32> -> vector<2x32xf32>
    %c0_162 = arith.constant 0 : index
    %c0_163 = arith.constant 0 : index
    %310 = vector.load %arg6[%c0_162, %c0_163] : memref<32x32xbf16, #tpu.memory_space<vmem>>, vector<32x32xbf16>
    %cst_164 = arith.constant dense<0.000000e+00> : vector<2x32xf32>
    %311 = tpu.matmul %305, %310, %cst_164 {dimension_numbers = #tpu.dot_dimension_numbers<[1], [0], [0], [1], [0, 0, 1, 1], [], []>} : vector<2x32xbf16>, vector<32x32xbf16>, vector<2x32xf32> -> vector<2x32xf32>
    %c0_165 = arith.constant 0 : index
    %c0_166 = arith.constant 0 : index
    %312 = vector.load %arg7[%c0_165, %c0_166] : memref<1x32xf32, #tpu.memory_space<vmem>>, vector<1x32xf32>
    %313 = vector.broadcast %312 : vector<1x32xf32> to vector<2x32xf32>
    %314 = arith.addf %311, %313 : vector<2x32xf32>
    %315 = arith.index_cast %c7_i32 : i32 to index
    %c0_167 = arith.constant 0 : index
    %c0_168 = arith.constant 0 : index
    %316 = vector.load %arg1[%315, %c0_167, %c0_168] : memref<8x2x32xf32, #tpu.memory_space<vmem>>, vector<1x2x32xf32>
    %317 = vector.shape_cast %316 : vector<1x2x32xf32> to vector<2x32xf32>
    %318 = arith.addf %317, %307 : vector<2x32xf32>
    %319 = arith.negf %318 : vector<2x32xf32>
    %320 = math.exp %319 : vector<2x32xf32>
    %cst_169 = arith.constant 1.000000e+00 : f32
    %321 = vector.broadcast %cst_169 : f32 to vector<2x32xf32>
    %322 = arith.addf %321, %320 : vector<2x32xf32>
    %323 = arith.divf %321, %322 : vector<2x32xf32>
    %324 = arith.index_cast %c7_i32 : i32 to index
    %c0_170 = arith.constant 0 : index
    %c0_171 = arith.constant 0 : index
    %325 = vector.load %arg2[%324, %c0_170, %c0_171] : memref<8x2x32xf32, #tpu.memory_space<vmem>>, vector<1x2x32xf32>
    %326 = vector.shape_cast %325 : vector<1x2x32xf32> to vector<2x32xf32>
    %327 = arith.addf %326, %309 : vector<2x32xf32>
    %328 = arith.negf %327 : vector<2x32xf32>
    %329 = math.exp %328 : vector<2x32xf32>
    %cst_172 = arith.constant 1.000000e+00 : f32
    %330 = vector.broadcast %cst_172 : f32 to vector<2x32xf32>
    %331 = arith.addf %330, %329 : vector<2x32xf32>
    %332 = arith.divf %330, %331 : vector<2x32xf32>
    %333 = arith.index_cast %c7_i32 : i32 to index
    %c0_173 = arith.constant 0 : index
    %c0_174 = arith.constant 0 : index
    %334 = vector.load %arg3[%333, %c0_173, %c0_174] : memref<8x2x32xf32, #tpu.memory_space<vmem>>, vector<1x2x32xf32>
    %335 = vector.shape_cast %334 : vector<1x2x32xf32> to vector<2x32xf32>
    %336 = arith.mulf %323, %314 : vector<2x32xf32>
    %337 = arith.addf %335, %336 : vector<2x32xf32>
    %338 = math.tanh %337 : vector<2x32xf32>
    %cst_175 = arith.constant 1.000000e+00 : f32
    %339 = vector.broadcast %cst_175 : f32 to vector<2x32xf32>
    %340 = arith.subf %339, %332 : vector<2x32xf32>
    %341 = arith.mulf %340, %338 : vector<2x32xf32>
    %342 = arith.mulf %332, %300 : vector<2x32xf32>
    %343 = arith.addf %341, %342 : vector<2x32xf32>
    %344 = arith.index_cast %c7_i32 : i32 to index
    %c0_176 = arith.constant 0 : index
    %c0_177 = arith.constant 0 : index
    %345 = vector.load %arg8[%344, %c0_176, %c0_177] : memref<8x2x32xf32, #tpu.memory_space<vmem>>, vector<1x2x32xf32>
    %346 = vector.shape_cast %345 : vector<1x2x32xf32> to vector<2x32xf32>
    %347 = vector.shape_cast %343 : vector<2x32xf32> to vector<1x2x32xf32>
    tpu.vector_store %arg8[%344, %c0_176, %c0_177], %347 {strides = array<i32>} : memref<8x2x32xf32, #tpu.memory_space<vmem>>, vector<1x2x32xf32>,
    %c8_i32 = arith.constant 8 : i32
    %c0_178 = arith.constant 0 : index
    %c0_179 = arith.constant 0 : index
    %348 = vector.load %arg9[%c0_178, %c0_179] : memref<2x32xf32, #tpu.memory_space<vmem>>, vector<2x32xf32>
    tpu.vector_store %arg9[%c0_178, %c0_179], %343 {strides = array<i32>} : memref<2x32xf32, #tpu.memory_space<vmem>>, vector<2x32xf32>,
    return
  }
  func.func @transform_0(%arg0: i32) -> (i32, i32, i32) {
    %c0_i32 = arith.constant 0 : i32
    %c0_i32_0 = arith.constant 0 : i32
    %c0_i32_1 = arith.constant 0 : i32
    return %arg0, %c0_i32, %c0_i32_0 : i32, i32, i32
  }
  func.func @transform_1(%arg0: i32) -> (i32, i32, i32) {
    %c0_i32 = arith.constant 0 : i32
    %c0_i32_0 = arith.constant 0 : i32
    %c0_i32_1 = arith.constant 0 : i32
    return %arg0, %c0_i32, %c0_i32_0 : i32, i32, i32
  }
  func.func @transform_2(%arg0: i32) -> (i32, i32, i32) {
    %c0_i32 = arith.constant 0 : i32
    %c0_i32_0 = arith.constant 0 : i32
    %c0_i32_1 = arith.constant 0 : i32
    return %arg0, %c0_i32, %c0_i32_0 : i32, i32, i32
  }
  func.func @transform_3(%arg0: i32) -> (i32, i32) {
    %c0_i32 = arith.constant 0 : i32
    %c0_i32_0 = arith.constant 0 : i32
    %c0_i32_1 = arith.constant 0 : i32
    return %c0_i32, %c0_i32_0 : i32, i32
  }
  func.func @transform_4(%arg0: i32) -> (i32, i32) {
    %c0_i32 = arith.constant 0 : i32
    %c0_i32_0 = arith.constant 0 : i32
    %c0_i32_1 = arith.constant 0 : i32
    return %c0_i32, %c0_i32_0 : i32, i32
  }
  func.func @transform_5(%arg0: i32) -> (i32, i32) {
    %c0_i32 = arith.constant 0 : i32
    %c0_i32_0 = arith.constant 0 : i32
    %c0_i32_1 = arith.constant 0 : i32
    return %c0_i32, %c0_i32_0 : i32, i32
  }
  func.func @transform_6(%arg0: i32) -> (i32, i32) {
    %c0_i32 = arith.constant 0 : i32
    %c0_i32_0 = arith.constant 0 : i32
    %c0_i32_1 = arith.constant 0 : i32
    return %c0_i32, %c0_i32_0 : i32, i32
  }
  func.func @transform_7(%arg0: i32) -> (i32, i32, i32) {
    %c0_i32 = arith.constant 0 : i32
    %c0_i32_0 = arith.constant 0 : i32
    %c0_i32_1 = arith.constant 0 : i32
    return %arg0, %c0_i32, %c0_i32_0 : i32, i32, i32
  }
  func.func @transform_8(%arg0: i32) -> (i32, i32) {
    %c0_i32 = arith.constant 0 : i32
    %c0_i32_0 = arith.constant 0 : i32
    %c0_i32_1 = arith.constant 0 : i32
    return %c0_i32, %c0_i32_0 : i32, i32
  }
}

</mosaic_0001>

<bundles_post_ra>
// kernel: gru_encoder_forward.1
= control target key start
LH: loop header
LB: loop body
LE: loop exit
PB: predicated region body
PF: predicated region fallthrough
CT: control target
= control target key end

     0   :  { %vm34_vm0 = vcmask 254976   ;;  %v1680_v4 = vmov 0.0   ;;  %s2075_s0 = inlined_call_operand.vmem [shape: f32[8,2,32], index: 0, kind: input, shape index: {}]   ;;  %s2076_s1 = inlined_call_operand.vmem [shape: f32[8,2,32], index: 1, kind: input, shape index: {}]   ;;  %s2077_s2 = inlined_call_operand.vmem [shape: f32[8,2,32], index: 2, kind: input, shape index: {}]   ;;  %s2078_s3 = inlined_call_operand.vmem [shape: bf16[32,32], index: 3, kind: input, shape index: {}]   ;;  %s2079_s4 = inlined_call_operand.vmem [shape: bf16[32,32], index: 4, kind: input, shape index: {}]   ;;  %s2080_s5 = inlined_call_operand.vmem [shape: bf16[32,32], index: 5, kind: input, shape index: {}]   ;;  %s2081_s6 = inlined_call_operand.vmem [shape: f32[1,32], index: 6, kind: input, shape index: {}]   ;;  %s2082_s7 = inlined_call_operand.vmem [shape: f32[8,2,32], index: 7, kind: output, shape index: {0}]   ;;  %s2083_s8 = inlined_call_operand.hbm [shape: f32[2,32], index: 8, kind: output, shape index: {1}]  }
   0x1   :  { %v1517_v0 = vld [vmem:[%s2078_s3 + $0x8] sm:$0xff]  ;;  %v1516_v2 = vld [vmem:[%s2078_s3] sm:$0xff]  ;;  %35 = vst.msk [vmem:[#allocation2] sm:$0x3] %vm34_vm0, %v1680_v4 }
   0x2   :  { %v1519_v1 = vld [vmem:[%s2079_s4 + $0x8] sm:$0xff]  ;;  %v1518_v3 = vld [vmem:[%s2079_s4] sm:$0xff]  ;;  %64 = vmatpush.bf16.msra.mxu0 %v1517_v0 }
   0x3   :  { %v1521_v5 = vld [vmem:[%s2080_s5 + $0x8] sm:$0xff]  ;;  %v1520_v6 = vld [vmem:[%s2080_s5] sm:$0xff]  ;;  %93 = vmatpush.bf16.msra.mxu1 %v1519_v1 }
   0x4   :  { %126 = vmatpush.bf16.msra.mxu2 %v1521_v5 }
   0x5   :  { %14 = vsyncpa [#allocation3], 0  ;;  %vm54_vm1 = vcmask 261120   ;;  %v133_v9 = vld [vmem:[%s2075_s0] sm:$0x3]  ;;  %v1523_v17 = vld [vmem:[%s2078_s3 + $0x8] sm:$0xff] }
   0x6   :  { %65 = vmatpush.bf16.msra.mxu0 %v1516_v2  ;;  %v154_v10 = vld [vmem:[%s2076_s1] sm:$0x3]  ;;  %v1525_v18 = vld [vmem:[%s2079_s4 + $0x8] sm:$0xff]  ;;  %211 = vmatpush.bf16.msra.mxu3 %v1523_v17  ;;  %v1314_v62 = vld [vmem:[%s2076_s1 + $0x2] sm:$0x3]  ;;  %s1245_s22 = sshll.u32 %s2083_s8, 4  ;;  %s1246_s22 = int_to_ptr.hbm [resolvable:$true] %s1245_s22 }
   0x7   :  { %94 = vmatpush.bf16.msra.mxu1 %v1518_v3  ;;  %v1527_v19 = vld [vmem:[%s2080_s5 + $0x8] sm:$0xff]  ;;  %v1522_v20 = vld [vmem:[%s2078_s3] sm:$0xff] }
   0x8   :  { %127 = vmatpush.bf16.msra.mxu2 %v1520_v6  ;;  %v1746_v7 = vld [vmem:[#allocation2] sm:$0x3]  ;;  %v1312_v3 = vld [vmem:[%s2075_s0 + $0x2] sm:$0x3]  ;;  %v1529_v4 = vld [vmem:[%s2078_s3 + $0x8] sm:$0xff] }
   0x9   :  { %v37_v8 = vpack.c.bf16 %v1746_v7, %v1746_v7  ;;  %v1524_v21 = vld [vmem:[%s2079_s4] sm:$0xff]  ;;  %v1531_v5 = vld [vmem:[%s2079_s4 + $0x8] sm:$0xff] }
   0xa   :  { %240 = vmatpush.bf16.msrb.mxu0 %v1525_v18  ;;  %v1526_v22 = vld [vmem:[%s2080_s5] sm:$0xff]  ;;  %212 = vmatpush.bf16.msra.mxu3 %v1522_v20 }
   0xb   :  { %1264 = vmatmul.msk.bf16.vlgmr.msra.gmra.mxu0 %vm54_vm1, %v37_v8  ;;  %1273 = vmatmul.msk.bf16.vlgmr.msra.gmra.mxu1 %vm54_vm1, %v37_v8  ;;  %v1566_v35 = vld [vmem:[%s2081_s6] ss:$0 sm:$0xff] }
   0xc   :  { %1282 = vmatmul.msk.bf16.vlgmr.msra.gmra.mxu2 %vm54_vm1, %v37_v8  ;;  %273 = vmatpush.bf16.msrb.mxu1 %v1527_v19  ;;  %v175_v47 = vld [vmem:[%s2077_s2] sm:$0x3] }
   0xd   :  { %361 = vmatpush.bf16.msrb.mxu2 %v1529_v4 }
   0xe   :  { %241 = vmatpush.bf16.msrb.mxu0 %v1524_v21  ;;  %390 = vmatpush.bf16.msrb.mxu3 %v1531_v5 }
  0x10   :  { %274 = vmatpush.bf16.msrb.mxu1 %v1526_v22 }
  0x88   :  { %v67_v11 = vpop.f32.mrf.mxu0  ;;  %v96_v12 = vpop.f32.mrf.mxu1 }
  0x89   :  { %v134_v13 = vadd.f32 %v133_v9, %v67_v11  ;;  %v155_v14 = vadd.f32 %v154_v10, %v96_v12  ;;  %v1528_v9 = vld [vmem:[%s2078_s3] sm:$0xff] }
  0x8a   :  { %v1530_v10 = vld [vmem:[%s2079_s4] sm:$0xff]  ;;  %362 = vmatpush.bf16.msrb.mxu2 %v1528_v9 }
  0x8b   :  { %v1283_v15 = vmul.f32 -1.442695, %v134_v13  ;;  %v1284_v16 = vmul.f32 -1.442695, %v155_v14  ;;  %v1532_v12 = vld [vmem:[%s2080_s5] sm:$0xff]  ;;  %391 = vmatpush.bf16.msrb.mxu3 %v1530_v10 }
  0x8d   :  { %1574 = vpow2.f32 %v1283_v15 }
  0x8e   :  { %1576 = vpow2.f32 %v1284_v16 }
  0x8f   :  { %v129_v23 = vpop.f32.mrf.mxu2 }
  0x90   :  { %v69_v24 = vpop.f32.mrf.mxu0  ;;  %v98_v25 = vpop.f32.mrf.mxu1  ;;  %v130_v42 = vadd.f32 %v1566_v35, %v129_v23 }
  0x93   :  { %v1575_v26 = vpop.eup %1574 }
  0x94   :  { %v1577_v27 = vpop.eup %1576  ;;  %v138_v28 = vadd.f32 1.0, %v1575_v26 }
  0x95   :  { %v159_v29 = vadd.f32 1.0, %v1577_v27  ;;  %v1567_v27 = vld [vmem:[%s2081_s6] ss:$0 sm:$0xff] }
  0x96   :  { %1578 = vrcp.f32 %v138_v28  ;;  %v150_v38 = vand.u32 2147483648, %v138_v28  ;;  %v148_v40 = vand.u32 2147483647, %v138_v28  ;;  %vm144_vm3 = vweird.f32 %v138_v28 }
  0x97   :  { %1580 = vrcp.f32 %v159_v29  ;;  %v131_v30 = vpop.f32.mrf.mxu2  ;;  %vm165_vm6 = vweird.f32 %v159_v29  ;;  %v171_v49 = vand.u32 2147483648, %v159_v29  ;;  %v169_v51 = vand.u32 2147483647, %v159_v29 }
  0x98   :  { %v151_v44 = vor.u32 1.1754944e-38, %v150_v38  ;;  %vm149_vm5 = vcmp.eq.f32.partialorder %v148_v40, 8.507059e+37 }
  0x99   :  { %v172_v54 = vor.u32 1.1754944e-38, %v171_v49  ;;  %vm170_vm9 = vcmp.eq.f32.partialorder %v169_v51, 8.507059e+37 }
  0x9c   :  { %v1579_v31 = vpop.eup %1578 }
  0x9d   :  { %v1581_v32 = vpop.eup %1580  ;;  %v140_v33 = vmul.f32 %v1579_v31, %v138_v28  ;;  %vm145_vm2 = vweird.f32 %v1579_v31 }
  0x9e   :  { %v161_v34 = vmul.f32 %v1581_v32, %v159_v29  ;;  %vm146_vm4 = vmor %vm144_vm3, %vm145_vm2  ;;  %vm166_vm7 = vweird.f32 %v1581_v32 }
  0x9f   :  { %v141_v36 = vsub.f32 1.0, %v140_v33  ;;  %vm167_vm8 = vmor %vm165_vm6, %vm166_vm7 }
  0xa0   :  { %v162_v37 = vsub.f32 1.0, %v161_v34 }
  0xa1   :  { %v142_v39 = vmul.f32 %v1579_v31, %v141_v36 }
  0xa2   :  { %v163_v41 = vmul.f32 %v1581_v32, %v162_v37  ;;  %v1316_v37 = vld [vmem:[%s2077_s2 + $0x2] sm:$0x3] }
  0xa3   :  { %v143_v43 = vadd.f32 %v1579_v31, %v142_v39 }
  0xa4   :  { %v164_v48 = vadd.f32 %v1581_v32, %v163_v41 }
  0xa5   :  { %v147_v45 = vsel %vm146_vm4, %v1579_v31, %v143_v43 }
  0xa6   :  { %v152_v46 = vsel %vm149_vm5, %v151_v44, %v147_v45  ;;  %v168_v53 = vsel %vm167_vm8, %v1581_v32, %v164_v48 }
  0xa7   :  { %v176_v50 = vmul.f32 %v152_v46, %v130_v42  ;;  %v173_v55 = vsel %vm170_vm9, %v172_v54, %v168_v53  ;;  %v1347_v53 = vld [vmem:[%s2076_s1 + $0x4] sm:$0x3] }
  0xa8   :  { %v179_v56 = vsub.f32 1.0, %v173_v55  ;;  %v181_v59 = vmul.f32 %v173_v55, %v1746_v7  ;;  %v1533_v7 = vld [vmem:[%s2080_s5 + $0x8] sm:$0xff] }
  0xa9   :  { %v177_v52 = vadd.f32 %v176_v50, %v175_v47  ;;  %423 = vmatpush.bf16.msra.mxu0 %v1533_v7 }
  0xab   :  { %1582 = vtanh.f32 %v177_v52  ;;  %v1345_v52 = vld [vmem:[%s2075_s0 + $0x4] sm:$0x3] }
  0xad   :  { %424 = vmatpush.bf16.msra.mxu0 %v1532_v12 }
  0xb1   :  { %v1583_v57 = vpop.eup %1582 }
  0xb2   :  { %v180_v58 = vmul.f32 %v1583_v57, %v179_v56 }
  0xb4   :  { %v1784_v60 = vadd.f32 %v181_v59, %v180_v58 }
  0xb6   :  { %184 = vst.msk [vmem:[%s2082_s7] sm:$0x3] %vm34_vm0, %v1784_v60  ;;  %v185_v61 = vpack.c.bf16 %v1784_v60, %v1784_v60 }
  0xb8   :  { %1293 = vmatmul.msk.bf16.vlgmr.msra.gmra.mxu3 %vm54_vm1, %v185_v61  ;;  %1302 = vmatmul.msk.bf16.vlgmr.msrb.gmra.mxu0 %vm54_vm1, %v185_v61 }
  0xb9   :  { %1311 = vmatmul.msk.bf16.vlgmr.msrb.gmra.mxu1 %vm54_vm1, %v185_v61  ;;  %v1535_v61 = vld [vmem:[%s2078_s3 + $0x8] sm:$0xff] }
  0xba   :  { %511 = vmatpush.bf16.msra.mxu1 %v1535_v61 }
 0x135   :  { %v243_v63 = vpop.f32.mrf.mxu0 }
 0x136   :  { %v304_v0 = vadd.f32 %v1314_v62, %v243_v63  ;;  %v276_v1 = vpop.f32.mrf.mxu1  ;;  %v1537_v62 = vld [vmem:[%s2079_s4 + $0x8] sm:$0xff] }
 0x137   :  { %v277_v33 = vadd.f32 %v1567_v27, %v276_v1  ;;  %v1539_v63 = vld [vmem:[%s2080_s5 + $0x8] sm:$0xff]  ;;  %540 = vmatpush.bf16.msra.mxu2 %v1537_v62  ;;  %v1536_v1 = vld [vmem:[%s2079_s4] sm:$0xff] }
 0x138   :  { %v1315_v2 = vmul.f32 -1.442695, %v304_v0  ;;  %v1534_v0 = vld [vmem:[%s2078_s3] sm:$0xff]  ;;  %573 = vmatpush.bf16.msra.mxu3 %v1539_v63 }
 0x139   :  { %512 = vmatpush.bf16.msra.mxu1 %v1534_v0 }
 0x13a   :  { %1584 = vpow2.f32 %v1315_v2  ;;  %v1538_v2 = vld [vmem:[%s2080_s5] sm:$0xff] }
 0x13b   :  { %v214_v6 = vpop.f32.mrf.mxu3  ;;  %541 = vmatpush.bf16.msra.mxu2 %v1536_v1 }
 0x13c   :  { %v282_v8 = vadd.f32 %v1312_v3, %v214_v6  ;;  %574 = vmatpush.bf16.msra.mxu3 %v1538_v2  ;;  %v1569_v2 = vld [vmem:[%s2081_s6] ss:$0 sm:$0xff] }
 0x13d   :  { %v245_v11 = vpop.f32.mrf.mxu0 }
 0x13e   :  { %v1313_v13 = vmul.f32 -1.442695, %v282_v8  ;;  %v278_v14 = vpop.f32.mrf.mxu1 }
 0x140   :  { %v1585_v15 = vpop.eup %1584  ;;  %1586 = vpow2.f32 %v1313_v13 }
 0x141   :  { %v308_v16 = vadd.f32 1.0, %v1585_v15 }
 0x143   :  { %v216_v17 = vpop.f32.mrf.mxu3  ;;  %1588 = vrcp.f32 %v308_v16  ;;  %v320_v38 = vand.u32 2147483648, %v308_v16  ;;  %vm314_vm15 = vweird.f32 %v308_v16  ;;  %v318_v40 = vand.u32 2147483647, %v308_v16 }
 0x145   :  { %v321_v43 = vor.u32 1.1754944e-38, %v320_v38  ;;  %vm319_vm3 = vcmp.eq.f32.partialorder %v318_v40, 8.507059e+37  ;;  %v1378_v40 = vld [vmem:[%s2075_s0 + $0x6] sm:$0x3] }
 0x146   :  { %v1587_v18 = vpop.eup %1586 }
 0x147   :  { %v286_v19 = vadd.f32 1.0, %v1587_v18 }
 0x149   :  { %1590 = vrcp.f32 %v286_v19  ;;  %v1589_v20 = vpop.eup %1588  ;;  %v298_v26 = vand.u32 2147483648, %v286_v19  ;;  %v296_v29 = vand.u32 2147483647, %v286_v19  ;;  %vm292_vm11 = vweird.f32 %v286_v19 }
 0x14a   :  { %v310_v21 = vmul.f32 %v1589_v20, %v308_v16  ;;  %vm315_vm14 = vweird.f32 %v1589_v20  ;;  %v1568_v16 = vld [vmem:[%s2081_s6] ss:$0 sm:$0xff] }
 0x14b   :  { %v299_v32 = vor.u32 1.1754944e-38, %v298_v26  ;;  %vm297_vm13 = vcmp.eq.f32.partialorder %v296_v29, 8.507059e+37  ;;  %vm316_vm2 = vmor %vm314_vm15, %vm315_vm14 }
 0x14c   :  { %v311_v24 = vsub.f32 1.0, %v310_v21 }
 0x14e   :  { %v312_v30 = vmul.f32 %v1589_v20, %v311_v24 }
 0x14f   :  { %v1591_v22 = vpop.eup %1590 }
 0x150   :  { %v288_v23 = vmul.f32 %v1591_v22, %v286_v19  ;;  %vm293_vm10 = vweird.f32 %v1591_v22  ;;  %v313_v35 = vadd.f32 %v1589_v20, %v312_v30 }
 0x151   :  { %vm294_vm12 = vmor %vm292_vm11, %vm293_vm10 }
 0x152   :  { %v289_v25 = vsub.f32 1.0, %v288_v23  ;;  %v317_v42 = vsel %vm316_vm2, %v1589_v20, %v313_v35 }
 0x153   :  { %v322_v44 = vsel %vm319_vm3, %v321_v43, %v317_v42 }
 0x154   :  { %v290_v28 = vmul.f32 %v1591_v22, %v289_v25  ;;  %v329_v45 = vsub.f32 1.0, %v322_v44  ;;  %v331_v48 = vmul.f32 %v322_v44, %v1784_v60  ;;  %v1349_v25 = vld [vmem:[%s2077_s2 + $0x4] sm:$0x3]  ;;  %v1380_v44 = vld [vmem:[%s2076_s1 + $0x6] sm:$0x3] }
 0x156   :  { %v291_v31 = vadd.f32 %v1591_v22, %v290_v28 }
 0x158   :  { %v295_v34 = vsel %vm294_vm12, %v1591_v22, %v291_v31 }
 0x159   :  { %v300_v36 = vsel %vm297_vm13, %v299_v32, %v295_v34 }
 0x15a   :  { %v326_v39 = vmul.f32 %v300_v36, %v277_v33 }
 0x15c   :  { %v327_v41 = vadd.f32 %v1316_v37, %v326_v39 }
 0x15e   :  { %1592 = vtanh.f32 %v327_v41 }
 0x164   :  { %v1593_v46 = vpop.eup %1592 }
 0x165   :  { %v330_v47 = vmul.f32 %v1593_v46, %v329_v45 }
 0x167   :  { %v1827_v49 = vadd.f32 %v331_v48, %v330_v47 }
 0x169   :  { %1317 = vst.msk [vmem:[%s2082_s7 + $0x2] sm:$0x3] %vm34_vm0, %v1827_v49  ;;  %v335_v50 = vpack.c.bf16 %v1827_v49, %v1827_v49 }
 0x16b   :  { %1326 = vmatmul.msk.bf16.vlgmr.msrb.gmra.mxu2 %vm54_vm1, %v335_v50  ;;  %1335 = vmatmul.msk.bf16.vlgmr.msrb.gmra.mxu3 %vm54_vm1, %v335_v50 }
 0x16c   :  { %1344 = vmatmul.msk.bf16.vlgmr.msra.gmra.mxu0 %vm54_vm1, %v335_v50  ;;  %v1543_v50 = vld [vmem:[%s2079_s4 + $0x8] sm:$0xff] }
 0x16d   :  { %690 = vmatpush.bf16.msrb.mxu1 %v1543_v50 }
 0x1e9   :  { %v426_v51 = vpop.f32.mrf.mxu0 }
 0x1ea   :  { %v427_v22 = vadd.f32 %v1568_v16, %v426_v51  ;;  %v1545_v51 = vld [vmem:[%s2080_s5 + $0x8] sm:$0xff] }
 0x1eb   :  { %723 = vmatpush.bf16.msrb.mxu2 %v1545_v51 }
 0x1ee   :  { %v364_v54 = vpop.f32.mrf.mxu2  ;;  %v393_v55 = vpop.f32.mrf.mxu3 }
 0x1ef   :  { %v432_v56 = vadd.f32 %v1345_v52, %v364_v54  ;;  %v454_v57 = vadd.f32 %v1347_v53, %v393_v55  ;;  %v1540_v55 = vld [vmem:[%s2078_s3] sm:$0xff] }
 0x1f1   :  { %v1346_v58 = vmul.f32 -1.442695, %v432_v56  ;;  %v1348_v59 = vmul.f32 -1.442695, %v454_v57  ;;  %v428_v60 = vpop.f32.mrf.mxu0  ;;  %v1542_v56 = vld [vmem:[%s2079_s4] sm:$0xff] }
 0x1f2   :  { %v1544_v57 = vld [vmem:[%s2080_s5] sm:$0xff]  ;;  %691 = vmatpush.bf16.msrb.mxu1 %v1542_v56 }
 0x1f3   :  { %1594 = vpow2.f32 %v1346_v58  ;;  %724 = vmatpush.bf16.msrb.mxu2 %v1544_v57 }
 0x1f4   :  { %1596 = vpow2.f32 %v1348_v59 }
 0x1f6   :  { %v366_v3 = vpop.f32.mrf.mxu2  ;;  %v395_v4 = vpop.f32.mrf.mxu3 }
 0x1f9   :  { %v1595_v5 = vpop.eup %1594 }
 0x1fa   :  { %v1597_v6 = vpop.eup %1596  ;;  %v436_v7 = vadd.f32 1.0, %v1595_v5 }
 0x1fb   :  { %v458_v8 = vadd.f32 1.0, %v1597_v6 }
 0x1fc   :  { %1598 = vrcp.f32 %v436_v7  ;;  %v448_v14 = vand.u32 2147483648, %v436_v7  ;;  %v446_v18 = vand.u32 2147483647, %v436_v7  ;;  %vm442_vm5 = vweird.f32 %v436_v7 }
 0x1fd   :  { %1600 = vrcp.f32 %v458_v8  ;;  %v470_v28 = vand.u32 2147483648, %v458_v8  ;;  %vm464_vm9 = vweird.f32 %v458_v8  ;;  %v468_v29 = vand.u32 2147483647, %v458_v8 }
 0x1fe   :  { %v449_v21 = vor.u32 1.1754944e-38, %v448_v14  ;;  %vm447_vm7 = vcmp.eq.f32.partialorder %v446_v18, 8.507059e+37 }
 0x1ff   :  { %v471_v32 = vor.u32 1.1754944e-38, %v470_v28  ;;  %vm469_vm11 = vcmp.eq.f32.partialorder %v468_v29, 8.507059e+37  ;;  %v1411_v29 = vld [vmem:[%s2075_s0 + $0x8] sm:$0x3] }
 0x202   :  { %v1599_v9 = vpop.eup %1598 }
 0x203   :  { %v1601_v10 = vpop.eup %1600  ;;  %v438_v11 = vmul.f32 %v1599_v9, %v436_v7  ;;  %vm443_vm4 = vweird.f32 %v1599_v9 }
 0x204   :  { %v460_v12 = vmul.f32 %v1601_v10, %v458_v8  ;;  %vm444_vm6 = vmor %vm442_vm5, %vm443_vm4  ;;  %vm465_vm8 = vweird.f32 %v1601_v10 }
 0x205   :  { %v439_v13 = vsub.f32 1.0, %v438_v11  ;;  %vm466_vm10 = vmor %vm464_vm9, %vm465_vm8 }
 0x206   :  { %v461_v15 = vsub.f32 1.0, %v460_v12 }
 0x207   :  { %v440_v17 = vmul.f32 %v1599_v9, %v439_v13  ;;  %v1382_v13 = vld [vmem:[%s2077_s2 + $0x6] sm:$0x3] }
 0x208   :  { %v462_v19 = vmul.f32 %v1601_v10, %v461_v15 }
 0x209   :  { %v441_v20 = vadd.f32 %v1599_v9, %v440_v17 }
 0x20a   :  { %v463_v26 = vadd.f32 %v1601_v10, %v462_v19 }
 0x20b   :  { %v445_v23 = vsel %vm444_vm6, %v1599_v9, %v441_v20 }
 0x20c   :  { %v450_v24 = vsel %vm447_vm7, %v449_v21, %v445_v23  ;;  %v467_v31 = vsel %vm466_vm10, %v1601_v10, %v463_v26 }
 0x20d   :  { %v476_v27 = vmul.f32 %v450_v24, %v427_v22  ;;  %v472_v33 = vsel %vm469_vm11, %v471_v32, %v467_v31 }
 0x20e   :  { %v479_v34 = vsub.f32 1.0, %v472_v33  ;;  %v481_v37 = vmul.f32 %v472_v33, %v1827_v49  ;;  %v1541_v49 = vld [vmem:[%s2078_s3 + $0x8] sm:$0xff] }
 0x20f   :  { %v477_v30 = vadd.f32 %v1349_v25, %v476_v27  ;;  %661 = vmatpush.bf16.msrb.mxu0 %v1541_v49 }
 0x211   :  { %1602 = vtanh.f32 %v477_v30  ;;  %v1413_v30 = vld [vmem:[%s2076_s1 + $0x8] sm:$0x3] }
 0x213   :  { %662 = vmatpush.bf16.msrb.mxu0 %v1540_v55 }
 0x217   :  { %v1603_v35 = vpop.eup %1602 }
 0x218   :  { %v480_v36 = vmul.f32 %v1603_v35, %v479_v34 }
 0x21a   :  { %v1870_v38 = vadd.f32 %v481_v37, %v480_v36 }
 0x21c   :  { %1350 = vst.msk [vmem:[%s2082_s7 + $0x4] sm:$0x3] %vm34_vm0, %v1870_v38  ;;  %v485_v39 = vpack.c.bf16 %v1870_v38, %v1870_v38 }
 0x21e   :  { %1359 = vmatmul.msk.bf16.vlgmr.msra.gmra.mxu1 %vm54_vm1, %v485_v39  ;;  %1368 = vmatmul.msk.bf16.vlgmr.msra.gmra.mxu2 %vm54_vm1, %v485_v39 }
 0x21f   :  { %1377 = vmatmul.msk.bf16.vlgmr.msra.gmra.mxu3 %vm54_vm1, %v485_v39 }
 0x29b   :  { %v514_v41 = vpop.f32.mrf.mxu1 }
 0x29c   :  { %v582_v42 = vadd.f32 %v1378_v40, %v514_v41  ;;  %v1547_v40 = vld [vmem:[%s2078_s3 + $0x8] sm:$0xff] }
 0x29d   :  { %v1549_v41 = vld [vmem:[%s2079_s4 + $0x8] sm:$0xff]  ;;  %811 = vmatpush.bf16.msrb.mxu3 %v1547_v40 }
 0x29e   :  { %v1379_v43 = vmul.f32 -1.442695, %v582_v42  ;;  %v1551_v42 = vld [vmem:[%s2080_s5 + $0x8] sm:$0xff]  ;;  %840 = vmatpush.bf16.msra.mxu0 %v1549_v41 }
 0x29f   :  { %873 = vmatpush.bf16.msra.mxu1 %v1551_v42 }
 0x2a0   :  { %1604 = vpow2.f32 %v1379_v43 }
 0x2a1   :  { %v543_v45 = vpop.f32.mrf.mxu2 }
 0x2a2   :  { %v604_v46 = vadd.f32 %v1380_v44, %v543_v45  ;;  %v576_v47 = vpop.f32.mrf.mxu3 }
 0x2a3   :  { %v516_v48 = vpop.f32.mrf.mxu1  ;;  %v577_v10 = vadd.f32 %v1569_v2, %v576_v47  ;;  %v1548_v47 = vld [vmem:[%s2079_s4] sm:$0xff] }
 0x2a4   :  { %v1381_v52 = vmul.f32 -1.442695, %v604_v46  ;;  %v1546_v46 = vld [vmem:[%s2078_s3] sm:$0xff]  ;;  %841 = vmatpush.bf16.msra.mxu0 %v1548_v47 }
 0x2a5   :  { %v1550_v48 = vld [vmem:[%s2080_s5] sm:$0xff]  ;;  %812 = vmatpush.bf16.msrb.mxu3 %v1546_v46 }
 0x2a6   :  { %v1605_v53 = vpop.eup %1604  ;;  %1606 = vpow2.f32 %v1381_v52  ;;  %874 = vmatpush.bf16.msra.mxu1 %v1550_v48  ;;  %v1571_v47 = vld [vmem:[%s2081_s6] ss:$0 sm:$0xff] }
 0x2a7   :  { %v586_v54 = vadd.f32 1.0, %v1605_v53 }
 0x2a9   :  { %1608 = vrcp.f32 %v586_v54  ;;  %v545_v58 = vpop.f32.mrf.mxu2  ;;  %v598_v1 = vand.u32 2147483648, %v586_v54  ;;  %v596_v4 = vand.u32 2147483647, %v586_v54  ;;  %vm592_vm13 = vweird.f32 %v586_v54 }
 0x2aa   :  { %v578_v59 = vpop.f32.mrf.mxu3  ;;  %v1570_v58 = vld [vmem:[%s2081_s6] ss:$0 sm:$0xff] }
 0x2ab   :  { %v599_v8 = vor.u32 1.1754944e-38, %v598_v1  ;;  %vm597_vm15 = vcmp.eq.f32.partialorder %v596_v4, 8.507059e+37  ;;  %v1415_v4 = vld [vmem:[%s2077_s2 + $0x8] sm:$0x3] }
 0x2ac   :  { %v1607_v60 = vpop.eup %1606 }
 0x2ad   :  { %v608_v61 = vadd.f32 1.0, %v1607_v60 }
 0x2af   :  { %v1609_v62 = vpop.eup %1608  ;;  %1610 = vrcp.f32 %v608_v61  ;;  %v620_v15 = vand.u32 2147483648, %v608_v61  ;;  %v618_v17 = vand.u32 2147483647, %v608_v61  ;;  %vm614_vm3 = vweird.f32 %v608_v61 }
 0x2b0   :  { %v588_v63 = vmul.f32 %v1609_v62, %v586_v54  ;;  %vm593_vm12 = vweird.f32 %v1609_v62 }
 0x2b1   :  { %vm594_vm14 = vmor %vm592_vm13, %vm593_vm12  ;;  %v621_v20 = vor.u32 1.1754944e-38, %v620_v15  ;;  %vm619_vm5 = vcmp.eq.f32.partialorder %v618_v17, 8.507059e+37 }
 0x2b2   :  { %v589_v0 = vsub.f32 1.0, %v588_v63 }
 0x2b4   :  { %v590_v3 = vmul.f32 %v1609_v62, %v589_v0 }
 0x2b5   :  { %v1611_v5 = vpop.eup %1610 }
 0x2b6   :  { %v610_v6 = vmul.f32 %v1611_v5, %v608_v61  ;;  %v591_v7 = vadd.f32 %v1609_v62, %v590_v3  ;;  %vm615_vm2 = vweird.f32 %v1611_v5 }
 0x2b7   :  { %vm616_vm4 = vmor %vm614_vm3, %vm615_vm2 }
 0x2b8   :  { %v611_v9 = vsub.f32 1.0, %v610_v6  ;;  %v595_v11 = vsel %vm594_vm14, %v1609_v62, %v591_v7 }
 0x2b9   :  { %v600_v12 = vsel %vm597_vm15, %v599_v8, %v595_v11 }
 0x2ba   :  { %v612_v14 = vmul.f32 %v1611_v5, %v611_v9  ;;  %v626_v16 = vmul.f32 %v600_v12, %v577_v10 }
 0x2bc   :  { %v613_v18 = vadd.f32 %v1611_v5, %v612_v14  ;;  %v627_v19 = vadd.f32 %v1382_v13, %v626_v16 }
 0x2be   :  { %v617_v21 = vsel %vm616_vm4, %v1611_v5, %v613_v18  ;;  %1612 = vtanh.f32 %v627_v19  ;;  %v1446_v18 = vld [vmem:[%s2076_s1 + $0xa] sm:$0x3] }
 0x2bf   :  { %v622_v22 = vsel %vm619_vm5, %v621_v20, %v617_v21 }
 0x2c0   :  { %v629_v23 = vsub.f32 1.0, %v622_v22  ;;  %v631_v26 = vmul.f32 %v622_v22, %v1870_v38 }
 0x2c4   :  { %v1613_v24 = vpop.eup %1612 }
 0x2c5   :  { %v630_v25 = vmul.f32 %v1613_v24, %v629_v23  ;;  %v1444_v23 = vld [vmem:[%s2075_s0 + $0xa] sm:$0x3] }
 0x2c7   :  { %v1913_v27 = vadd.f32 %v631_v26, %v630_v25 }
 0x2c9   :  { %1383 = vst.msk [vmem:[%s2082_s7 + $0x6] sm:$0x3] %vm34_vm0, %v1913_v27  ;;  %v635_v28 = vpack.c.bf16 %v1913_v27, %v1913_v27 }
 0x2cb   :  { %1392 = vmatmul.msk.bf16.vlgmr.msrb.gmra.mxu0 %vm54_vm1, %v635_v28  ;;  %1401 = vmatmul.msk.bf16.vlgmr.msrb.gmra.mxu1 %vm54_vm1, %v635_v28 }
 0x2cc   :  { %1410 = vmatmul.msk.bf16.vlgmr.msrb.gmra.mxu2 %vm54_vm1, %v635_v28 }
 0x348   :  { %v664_v31 = vpop.f32.mrf.mxu0  ;;  %v693_v32 = vpop.f32.mrf.mxu1 }
 0x349   :  { %v732_v33 = vadd.f32 %v1411_v29, %v664_v31  ;;  %v754_v34 = vadd.f32 %v1413_v30, %v693_v32  ;;  %v1553_v29 = vld [vmem:[%s2078_s3 + $0x8] sm:$0xff] }
 0x34a   :  { %v1555_v30 = vld [vmem:[%s2079_s4 + $0x8] sm:$0xff]  ;;  %961 = vmatpush.bf16.msra.mxu2 %v1553_v29 }
 0x34b   :  { %v1412_v35 = vmul.f32 -1.442695, %v732_v33  ;;  %v1414_v36 = vmul.f32 -1.442695, %v754_v34  ;;  %v1557_v31 = vld [vmem:[%s2080_s5 + $0x8] sm:$0xff]  ;;  %v1552_v33 = vld [vmem:[%s2078_s3] sm:$0xff]  ;;  %990 = vmatpush.bf16.msra.mxu3 %v1555_v30 }
 0x34c   :  { %v1554_v34 = vld [vmem:[%s2079_s4] sm:$0xff]  ;;  %1023 = vmatpush.bf16.msrb.mxu0 %v1557_v31 }
 0x34d   :  { %1614 = vpow2.f32 %v1412_v35 }
 0x34e   :  { %1616 = vpow2.f32 %v1414_v36  ;;  %v1556_v36 = vld [vmem:[%s2080_s5] sm:$0xff]  ;;  %962 = vmatpush.bf16.msra.mxu2 %v1552_v33 }
 0x34f   :  { %v726_v37 = vpop.f32.mrf.mxu2  ;;  %991 = vmatpush.bf16.msra.mxu3 %v1554_v34 }
 0x350   :  { %v666_v38 = vpop.f32.mrf.mxu0  ;;  %v695_v39 = vpop.f32.mrf.mxu1  ;;  %v727_v0 = vadd.f32 %v1570_v58, %v726_v37  ;;  %1024 = vmatpush.bf16.msrb.mxu0 %v1556_v36  ;;  %v1572_v36 = vld [vmem:[%s2081_s6] ss:$0 sm:$0xff] }
 0x353   :  { %v1615_v43 = vpop.eup %1614 }
 0x354   :  { %v1617_v44 = vpop.eup %1616  ;;  %v736_v45 = vadd.f32 1.0, %v1615_v43 }
 0x355   :  { %v758_v49 = vadd.f32 1.0, %v1617_v44 }
 0x356   :  { %1618 = vrcp.f32 %v736_v45  ;;  %v748_v57 = vand.u32 2147483648, %v736_v45  ;;  %v746_v60 = vand.u32 2147483647, %v736_v45  ;;  %vm742_vm7 = vweird.f32 %v736_v45 }
 0x357   :  { %1620 = vrcp.f32 %v758_v49  ;;  %v728_v50 = vpop.f32.mrf.mxu2  ;;  %v770_v5 = vand.u32 2147483648, %v758_v49  ;;  %vm764_vm11 = vweird.f32 %v758_v49  ;;  %v768_v7 = vand.u32 2147483647, %v758_v49 }
 0x358   :  { %v749_v63 = vor.u32 1.1754944e-38, %v748_v57  ;;  %vm747_vm9 = vcmp.eq.f32.partialorder %v746_v60, 8.507059e+37  ;;  %v1448_v57 = vld [vmem:[%s2077_s2 + $0xa] sm:$0x3] }
 0x359   :  { %v771_v10 = vor.u32 1.1754944e-38, %v770_v5  ;;  %vm769_vm13 = vcmp.eq.f32.partialorder %v768_v7, 8.507059e+37 }
 0x35c   :  { %v1619_v51 = vpop.eup %1618 }
 0x35d   :  { %v1621_v52 = vpop.eup %1620  ;;  %v738_v53 = vmul.f32 %v1619_v51, %v736_v45  ;;  %vm743_vm6 = vweird.f32 %v1619_v51 }
 0x35e   :  { %v760_v54 = vmul.f32 %v1621_v52, %v758_v49  ;;  %vm744_vm8 = vmor %vm742_vm7, %vm743_vm6  ;;  %vm765_vm10 = vweird.f32 %v1621_v52 }
 0x35f   :  { %v739_v55 = vsub.f32 1.0, %v738_v53  ;;  %vm766_vm12 = vmor %vm764_vm11, %vm765_vm10 }
 0x360   :  { %v761_v56 = vsub.f32 1.0, %v760_v54 }
 0x361   :  { %v740_v59 = vmul.f32 %v1619_v51, %v739_v55 }
 0x362   :  { %v762_v61 = vmul.f32 %v1621_v52, %v761_v56 }
 0x363   :  { %v741_v62 = vadd.f32 %v1619_v51, %v740_v59 }
 0x364   :  { %v763_v2 = vadd.f32 %v1621_v52, %v762_v61 }
 0x365   :  { %v745_v1 = vsel %vm744_vm8, %v1619_v51, %v741_v62 }
 0x366   :  { %v750_v3 = vsel %vm747_vm9, %v749_v63, %v745_v1  ;;  %v767_v9 = vsel %vm766_vm12, %v1621_v52, %v763_v2 }
 0x367   :  { %v776_v6 = vmul.f32 %v750_v3, %v727_v0  ;;  %v772_v11 = vsel %vm769_vm13, %v771_v10, %v767_v9  ;;  %v1479_v9 = vld [vmem:[%s2076_s1 + $0xc] sm:$0x3] }
 0x368   :  { %v779_v12 = vsub.f32 1.0, %v772_v11  ;;  %v781_v15 = vmul.f32 %v772_v11, %v1913_v27 }
 0x369   :  { %v777_v8 = vadd.f32 %v1415_v4, %v776_v6 }
 0x36b   :  { %1622 = vtanh.f32 %v777_v8  ;;  %v1477_v8 = vld [vmem:[%s2075_s0 + $0xc] sm:$0x3] }
 0x371   :  { %v1623_v13 = vpop.eup %1622 }
 0x372   :  { %v780_v14 = vmul.f32 %v1623_v13, %v779_v12 }
 0x374   :  { %v1956_v16 = vadd.f32 %v781_v15, %v780_v14 }
 0x376   :  { %1416 = vst.msk [vmem:[%s2082_s7 + $0x8] sm:$0x3] %vm34_vm0, %v1956_v16  ;;  %v785_v17 = vpack.c.bf16 %v1956_v16, %v1956_v16 }
 0x378   :  { %1425 = vmatmul.msk.bf16.vlgmr.msrb.gmra.mxu3 %vm54_vm1, %v785_v17  ;;  %1434 = vmatmul.msk.bf16.vlgmr.msra.gmra.mxu0 %vm54_vm1, %v785_v17 }
 0x379   :  { %1443 = vmatmul.msk.bf16.vlgmr.msra.gmra.mxu1 %vm54_vm1, %v785_v17  ;;  %v1559_v17 = vld [vmem:[%s2078_s3 + $0x8] sm:$0xff] }
 0x37a   :  { %1111 = vmatpush.bf16.msrb.mxu1 %v1559_v17 }
 0x3f5   :  { %v843_v19 = vpop.f32.mrf.mxu0 }
 0x3f6   :  { %v904_v20 = vadd.f32 %v1446_v18, %v843_v19  ;;  %v876_v21 = vpop.f32.mrf.mxu1  ;;  %v1561_v18 = vld [vmem:[%s2079_s4 + $0x8] sm:$0xff] }
 0x3f7   :  { %v877_v53 = vadd.f32 %v1571_v47, %v876_v21  ;;  %v1563_v19 = vld [vmem:[%s2080_s5 + $0x8] sm:$0xff]  ;;  %1140 = vmatpush.bf16.msrb.mxu2 %v1561_v18  ;;  %v1560_v21 = vld [vmem:[%s2079_s4] sm:$0xff] }
 0x3f8   :  { %v1447_v22 = vmul.f32 -1.442695, %v904_v20  ;;  %v1558_v20 = vld [vmem:[%s2078_s3] sm:$0xff]  ;;  %1173 = vmatpush.bf16.msrb.mxu3 %v1563_v19 }
 0x3f9   :  { %1112 = vmatpush.bf16.msrb.mxu1 %v1558_v20 }
 0x3fa   :  { %1624 = vpow2.f32 %v1447_v22  ;;  %v1562_v22 = vld [vmem:[%s2080_s5] sm:$0xff] }
 0x3fb   :  { %v814_v24 = vpop.f32.mrf.mxu3  ;;  %1141 = vmatpush.bf16.msrb.mxu2 %v1560_v21 }
 0x3fc   :  { %v882_v25 = vadd.f32 %v1444_v23, %v814_v24  ;;  %1174 = vmatpush.bf16.msrb.mxu3 %v1562_v22 }
 0x3fd   :  { %v845_v26 = vpop.f32.mrf.mxu0 }
 0x3fe   :  { %v1445_v27 = vmul.f32 -1.442695, %v882_v25  ;;  %v878_v28 = vpop.f32.mrf.mxu1 }
 0x400   :  { %v1625_v32 = vpop.eup %1624  ;;  %1626 = vpow2.f32 %v1445_v27 }
 0x401   :  { %v908_v35 = vadd.f32 1.0, %v1625_v32 }
 0x403   :  { %v816_v37 = vpop.f32.mrf.mxu3  ;;  %1628 = vrcp.f32 %v908_v35  ;;  %v920_v58 = vand.u32 2147483648, %v908_v35  ;;  %vm914_vm5 = vweird.f32 %v908_v35  ;;  %v918_v60 = vand.u32 2147483647, %v908_v35 }
 0x405   :  { %v921_v63 = vor.u32 1.1754944e-38, %v920_v58  ;;  %vm919_vm7 = vcmp.eq.f32.partialorder %v918_v60, 8.507059e+37  ;;  %v1510_v60 = vld [vmem:[%s2075_s0 + $0xe] sm:$0x3] }
 0x406   :  { %v1627_v38 = vpop.eup %1626 }
 0x407   :  { %v886_v39 = vadd.f32 1.0, %v1627_v38 }
 0x409   :  { %1630 = vrcp.f32 %v886_v39  ;;  %v1629_v40 = vpop.eup %1628  ;;  %v898_v46 = vand.u32 2147483648, %v886_v39  ;;  %v896_v49 = vand.u32 2147483647, %v886_v39  ;;  %vm892_vm15 = vweird.f32 %v886_v39 }
 0x40a   :  { %v910_v41 = vmul.f32 %v1629_v40, %v908_v35  ;;  %vm915_vm4 = vweird.f32 %v1629_v40 }
 0x40b   :  { %v899_v52 = vor.u32 1.1754944e-38, %v898_v46  ;;  %vm897_vm3 = vcmp.eq.f32.partialorder %v896_v49, 8.507059e+37  ;;  %vm916_vm6 = vmor %vm914_vm5, %vm915_vm4 }
 0x40c   :  { %v911_v44 = vsub.f32 1.0, %v910_v41 }
 0x40e   :  { %v912_v50 = vmul.f32 %v1629_v40, %v911_v44 }
 0x40f   :  { %v1631_v42 = vpop.eup %1630 }
 0x410   :  { %v888_v43 = vmul.f32 %v1631_v42, %v886_v39  ;;  %vm893_vm14 = vweird.f32 %v1631_v42  ;;  %v913_v55 = vadd.f32 %v1629_v40, %v912_v50 }
 0x411   :  { %vm894_vm2 = vmor %vm892_vm15, %vm893_vm14 }
 0x412   :  { %v889_v45 = vsub.f32 1.0, %v888_v43  ;;  %v917_v62 = vsel %vm916_vm6, %v1629_v40, %v913_v55 }
 0x413   :  { %v922_v0 = vsel %vm919_vm7, %v921_v63, %v917_v62 }
 0x414   :  { %v890_v48 = vmul.f32 %v1631_v42, %v889_v45  ;;  %v929_v1 = vsub.f32 1.0, %v922_v0  ;;  %v931_v4 = vmul.f32 %v922_v0, %v1956_v16  ;;  %v1481_v45 = vld [vmem:[%s2077_s2 + $0xc] sm:$0x3]  ;;  %v1512_v0 = vld [vmem:[%s2076_s1 + $0xe] sm:$0x3] }
 0x416   :  { %v891_v51 = vadd.f32 %v1631_v42, %v890_v48 }
 0x418   :  { %v895_v54 = vsel %vm894_vm2, %v1631_v42, %v891_v51 }
 0x419   :  { %v900_v56 = vsel %vm897_vm3, %v899_v52, %v895_v54 }
 0x41a   :  { %v926_v59 = vmul.f32 %v900_v56, %v877_v53 }
 0x41c   :  { %v927_v61 = vadd.f32 %v1448_v57, %v926_v59 }
 0x41e   :  { %1632 = vtanh.f32 %v927_v61 }
 0x424   :  { %v1633_v2 = vpop.eup %1632 }
 0x425   :  { %v930_v3 = vmul.f32 %v1633_v2, %v929_v1 }
 0x427   :  { %v1999_v5 = vadd.f32 %v931_v4, %v930_v3 }
 0x429   :  { %1449 = vst.msk [vmem:[%s2082_s7 + $0xa] sm:$0x3] %vm34_vm0, %v1999_v5  ;;  %v935_v6 = vpack.c.bf16 %v1999_v5, %v1999_v5 }
 0x42b   :  { %1458 = vmatmul.msk.bf16.vlgmr.msra.gmra.mxu2 %vm54_vm1, %v935_v6  ;;  %1467 = vmatmul.msk.bf16.vlgmr.msra.gmra.mxu3 %vm54_vm1, %v935_v6 }
 0x42c   :  { %1476 = vmatmul.msk.bf16.vlgmr.msrb.gmra.mxu0 %vm54_vm1, %v935_v6 }
 0x4a9   :  { %v1026_v7 = vpop.f32.mrf.mxu0 }
 0x4aa   :  { %v1027_v42 = vadd.f32 %v1572_v36, %v1026_v7 }
 0x4ae   :  { %v964_v10 = vpop.f32.mrf.mxu2  ;;  %v993_v11 = vpop.f32.mrf.mxu3 }
 0x4af   :  { %v1032_v12 = vadd.f32 %v1477_v8, %v964_v10  ;;  %v1054_v13 = vadd.f32 %v1479_v9, %v993_v11 }
 0x4b1   :  { %v1478_v14 = vmul.f32 -1.442695, %v1032_v12  ;;  %v1480_v15 = vmul.f32 -1.442695, %v1054_v13  ;;  %v1028_v16 = vpop.f32.mrf.mxu0 }
 0x4b2   :  { %v1573_v16 = vld [vmem:[%s2081_s6] ss:$0 sm:$0xff] }
 0x4b3   :  { %1634 = vpow2.f32 %v1478_v14 }
 0x4b4   :  { %1636 = vpow2.f32 %v1480_v15 }
 0x4b6   :  { %v966_v23 = vpop.f32.mrf.mxu2  ;;  %v995_v24 = vpop.f32.mrf.mxu3 }
 0x4b9   :  { %v1635_v25 = vpop.eup %1634 }
 0x4ba   :  { %v1637_v26 = vpop.eup %1636  ;;  %v1036_v27 = vadd.f32 1.0, %v1635_v25 }
 0x4bb   :  { %v1058_v28 = vadd.f32 1.0, %v1637_v26 }
 0x4bc   :  { %1638 = vrcp.f32 %v1036_v27  ;;  %v1048_v34 = vand.u32 2147483648, %v1036_v27  ;;  %v1046_v38 = vand.u32 2147483647, %v1036_v27  ;;  %vm1042_vm9 = vweird.f32 %v1036_v27 }
 0x4bd   :  { %1640 = vrcp.f32 %v1058_v28  ;;  %v1070_v48 = vand.u32 2147483648, %v1058_v28  ;;  %vm1064_vm13 = vweird.f32 %v1058_v28  ;;  %v1068_v49 = vand.u32 2147483647, %v1058_v28 }
 0x4be   :  { %v1049_v41 = vor.u32 1.1754944e-38, %v1048_v34  ;;  %vm1047_vm11 = vcmp.eq.f32.partialorder %v1046_v38, 8.507059e+37 }
 0x4bf   :  { %v1071_v52 = vor.u32 1.1754944e-38, %v1070_v48  ;;  %vm1069_vm15 = vcmp.eq.f32.partialorder %v1068_v49, 8.507059e+37 }
 0x4c2   :  { %v1639_v29 = vpop.eup %1638 }
 0x4c3   :  { %v1641_v30 = vpop.eup %1640  ;;  %v1038_v31 = vmul.f32 %v1639_v29, %v1036_v27  ;;  %vm1043_vm8 = vweird.f32 %v1639_v29  ;;  %v1514_v27 = vld [vmem:[%s2077_s2 + $0xe] sm:$0x3]  ;;  %s1681_s2 = smov [#allocation2]  }
 0x4c4   :  { %v1060_v32 = vmul.f32 %v1641_v30, %v1058_v28  ;;  %vm1044_vm10 = vmor %vm1042_vm9, %vm1043_vm8  ;;  %vm1065_vm12 = vweird.f32 %v1641_v30  ;;  %s1243_s6 = sshll.u32 %s1681_s2, 4  ;;  %s1244_s6 = int_to_ptr.vmem [resolvable:$true] %s1243_s6 }
 0x4c5   :  { %v1039_v33 = vsub.f32 1.0, %v1038_v31  ;;  %vm1066_vm14 = vmor %vm1064_vm13, %vm1065_vm12 }
 0x4c6   :  { %v1061_v35 = vsub.f32 1.0, %v1060_v32 }
 0x4c7   :  { %v1040_v37 = vmul.f32 %v1639_v29, %v1039_v33 }
 0x4c8   :  { %v1062_v39 = vmul.f32 %v1641_v30, %v1061_v35 }
 0x4c9   :  { %v1041_v40 = vadd.f32 %v1639_v29, %v1040_v37 }
 0x4ca   :  { %v1063_v46 = vadd.f32 %v1641_v30, %v1062_v39 }
 0x4cb   :  { %v1045_v43 = vsel %vm1044_vm10, %v1639_v29, %v1041_v40 }
 0x4cc   :  { %v1050_v44 = vsel %vm1047_vm11, %v1049_v41, %v1045_v43  ;;  %v1067_v51 = vsel %vm1066_vm14, %v1641_v30, %v1063_v46 }
 0x4cd   :  { %v1076_v47 = vmul.f32 %v1050_v44, %v1027_v42  ;;  %v1072_v53 = vsel %vm1069_vm15, %v1071_v52, %v1067_v51 }
 0x4ce   :  { %v1079_v54 = vsub.f32 1.0, %v1072_v53  ;;  %v1081_v57 = vmul.f32 %v1072_v53, %v1999_v5 }
 0x4cf   :  { %v1077_v50 = vadd.f32 %v1481_v45, %v1076_v47 }
 0x4d1   :  { %1642 = vtanh.f32 %v1077_v50 }
 0x4d7   :  { %v1643_v55 = vpop.eup %1642 }
 0x4d8   :  { %v1080_v56 = vmul.f32 %v1643_v55, %v1079_v54 }
 0x4da   :  { %v2042_v58 = vadd.f32 %v1081_v57, %v1080_v56 }
 0x4dc   :  { %1482 = vst.msk [vmem:[%s2082_s7 + $0xc] sm:$0x3] %vm34_vm0, %v2042_v58  ;;  %v1085_v59 = vpack.c.bf16 %v2042_v58, %v2042_v58 }
 0x4de   :  { %1491 = vmatmul.msk.bf16.vlgmr.msrb.gmra.mxu1 %vm54_vm1, %v1085_v59  ;;  %1500 = vmatmul.msk.bf16.vlgmr.msrb.gmra.mxu2 %vm54_vm1, %v1085_v59 }
 0x4df   :  { %1509 = vmatmul.msk.bf16.vlgmr.msrb.gmra.mxu3 %vm54_vm1, %v1085_v59 }
 0x55b   :  { %v1114_v61 = vpop.f32.mrf.mxu1 }
 0x55c   :  { %v1182_v62 = vadd.f32 %v1510_v60, %v1114_v61 }
 0x55e   :  { %v1511_v63 = vmul.f32 -1.442695, %v1182_v62 }
 0x560   :  { %1644 = vpow2.f32 %v1511_v63 }
 0x561   :  { %v1143_v1 = vpop.f32.mrf.mxu2 }
 0x562   :  { %v1204_v2 = vadd.f32 %v1512_v0, %v1143_v1  ;;  %v1176_v3 = vpop.f32.mrf.mxu3 }
 0x563   :  { %v1116_v4 = vpop.f32.mrf.mxu1  ;;  %v1177_v24 = vadd.f32 %v1573_v16, %v1176_v3 }
 0x564   :  { %v1513_v5 = vmul.f32 -1.442695, %v1204_v2 }
 0x566   :  { %v1645_v6 = vpop.eup %1644  ;;  %1646 = vpow2.f32 %v1513_v5 }
 0x567   :  { %v1186_v7 = vadd.f32 1.0, %v1645_v6 }
 0x569   :  { %1648 = vrcp.f32 %v1186_v7  ;;  %v1145_v8 = vpop.f32.mrf.mxu2  ;;  %v1198_v15 = vand.u32 2147483648, %v1186_v7  ;;  %v1196_v18 = vand.u32 2147483647, %v1186_v7  ;;  %vm1192_vm2 = vweird.f32 %v1186_v7 }
 0x56a   :  { %v1178_v9 = vpop.f32.mrf.mxu3 }
 0x56b   :  { %v1199_v22 = vor.u32 1.1754944e-38, %v1198_v15  ;;  %vm1197_vm4 = vcmp.eq.f32.partialorder %v1196_v18, 8.507059e+37 }
 0x56c   :  { %v1647_v10 = vpop.eup %1646 }
 0x56d   :  { %v1208_v11 = vadd.f32 1.0, %v1647_v10 }
 0x56f   :  { %v1649_v12 = vpop.eup %1648  ;;  %1650 = vrcp.f32 %v1208_v11  ;;  %v1220_v29 = vand.u32 2147483648, %v1208_v11  ;;  %v1218_v31 = vand.u32 2147483647, %v1208_v11  ;;  %vm1214_vm6 = vweird.f32 %v1208_v11 }
 0x570   :  { %v1188_v13 = vmul.f32 %v1649_v12, %v1186_v7  ;;  %vm1193_vm1 = vweird.f32 %v1649_v12 }
 0x571   :  { %vm1194_vm3 = vmor %vm1192_vm2, %vm1193_vm1  ;;  %v1221_v34 = vor.u32 1.1754944e-38, %v1220_v29  ;;  %vm1219_vm8 = vcmp.eq.f32.partialorder %v1218_v31, 8.507059e+37 }
 0x572   :  { %v1189_v14 = vsub.f32 1.0, %v1188_v13 }
 0x574   :  { %v1190_v17 = vmul.f32 %v1649_v12, %v1189_v14 }
 0x575   :  { %v1651_v19 = vpop.eup %1650 }
 0x576   :  { %v1210_v20 = vmul.f32 %v1651_v19, %v1208_v11  ;;  %v1191_v21 = vadd.f32 %v1649_v12, %v1190_v17  ;;  %vm1215_vm5 = vweird.f32 %v1651_v19 }
 0x577   :  { %vm1216_vm7 = vmor %vm1214_vm6, %vm1215_vm5 }
 0x578   :  { %v1211_v23 = vsub.f32 1.0, %v1210_v20  ;;  %v1195_v25 = vsel %vm1194_vm3, %v1649_v12, %v1191_v21 }
 0x579   :  { %v1200_v26 = vsel %vm1197_vm4, %v1199_v22, %v1195_v25 }
 0x57a   :  { %v1212_v28 = vmul.f32 %v1651_v19, %v1211_v23  ;;  %v1226_v30 = vmul.f32 %v1200_v26, %v1177_v24 }
 0x57c   :  { %v1213_v32 = vadd.f32 %v1651_v19, %v1212_v28  ;;  %v1227_v33 = vadd.f32 %v1514_v27, %v1226_v30 }
 0x57e   :  { %v1217_v35 = vsel %vm1216_vm7, %v1651_v19, %v1213_v32  ;;  %1652 = vtanh.f32 %v1227_v33 }
 0x57f   :  { %v1222_v36 = vsel %vm1219_vm8, %v1221_v34, %v1217_v35 }
 0x580   :  { %v1229_v37 = vsub.f32 1.0, %v1222_v36  ;;  %v1231_v40 = vmul.f32 %v1222_v36, %v2042_v58 }
 0x584   :  { %v1653_v38 = vpop.eup %1652 }
 0x585   :  { %v1230_v39 = vmul.f32 %v1653_v38, %v1229_v37 }
 0x587   :  { %v1232_v41 = vadd.f32 %v1231_v40, %v1230_v39 }
 0x589   :  { %1515 = vst.msk [vmem:[%s2082_s7 + $0xe] sm:$0x3] %vm34_vm0, %v1232_v41 }
 0x58a   :  { %1235 = vst.msk [vmem:[#allocation2] sm:$0x3] %vm34_vm0, %v1232_v41 }
 0x58b   :  { %1248 = dma.vmem_to_hbm [thread:$0]  %s1244_s6, 32, %s1246_s22, [#allocation3]  }
 0x58c   :  { %1678 = dma.done.wait [#allocation3], 32  }
 0x58d   :  { %1679 = vsyncadd [#allocation3], 4294967264 }
 0x58e   :  { %1255 = vsyncpa [#allocation3], 1 }

</bundles_post_ra>
